<compile_context>
chip_gen: v5e
topology: v5e:2x2
jax: 0.10.0
libtpu: 0.0.40
codegen_flags: <defaults>
</compile_context>

<pallas_src>
import functools

import jax
import jax.numpy as jnp
from jax.experimental import pallas as pl
from jax.experimental.pallas import tpu as pltpu


_VMEM_LIMIT = 48 * 1024 * 1024   # leaves headroom inside v7x's 64 MiB physical VMEM


# ----------------------------- tile selection ------------------------------ #

def _pick_m_tile(dim, target=512):
    """Row tile: multiple of 8 dividing `dim`, <= target; prefer >= 2 grid steps."""
    if dim % 8 != 0:
        return dim                      # irregular -> single full block (legal)
    cands = [t for t in range(8, dim + 1, 8) if dim % t == 0 and t <= target]
    if not cands:
        return dim
    tm = max(cands)
    if tm == dim and dim >= 16:
        halves = [t for t in cands if t <= dim // 2]
        if halves:
            tm = max(halves)            # keep both v7x TensorCores busy
    return tm


def _pick_lane_tile(dim, target=512):
    """Lane / contraction tile: multiple of 128 dividing `dim`, <= target; else full."""
    if dim % 128 != 0:
        return dim
    cands = [t for t in range(128, dim + 1, 128) if dim % t == 0 and t <= target]
    return max(cands) if cands else dim


# ----------------------------- Pallas kernels ------------------------------ #

def _linear_kernel(x_ref, w_ref, b_ref, o_ref, acc_ref):
    @pl.when(pl.program_id(2) == 0)
    def _():
        acc_ref[...] = jnp.zeros_like(acc_ref)

    acc_ref[...] += jnp.dot(x_ref[...], w_ref[...],
                            preferred_element_type=jnp.float32)

    @pl.when(pl.program_id(2) == pl.num_programs(2) - 1)
    def _():
        o_ref[...] = (acc_ref[...] + b_ref[...]).astype(o_ref.dtype)


def linear(x, w, b):
    """x: (M, K), w: (K, Nout) (torch weight transposed), b: (Nout,) -> (M, Nout)."""
    M, K = x.shape
    Nout = w.shape[1]
    tm = _pick_m_tile(M)
    tn = _pick_lane_tile(Nout)
    tk = _pick_lane_tile(K)
    grid = (M // tm, Nout // tn, K // tk)
    return pl.pallas_call(
        _linear_kernel,
        out_shape=jax.ShapeDtypeStruct((M, Nout), x.dtype),
        grid=grid,
        in_specs=[
            pl.BlockSpec((tm, tk), lambda i, j, k: (i, k)),
            pl.BlockSpec((tk, tn), lambda i, j, k: (k, j)),
            pl.BlockSpec((1, tn), lambda i, j, k: (0, j)),
        ],
        out_specs=pl.BlockSpec((tm, tn), lambda i, j, k: (i, j)),
        scratch_shapes=[pltpu.VMEM((tm, tn), jnp.float32)],
        compiler_params=pltpu.CompilerParams(
            dimension_semantics=("parallel", "parallel", "arbitrary"),
            vmem_limit_bytes=_VMEM_LIMIT),
    )(x, w, b.reshape(1, Nout))


def _linear_ln_kernel(x_ref, w_ref, b_ref, g_ref, beta_ref, o_ref, acc_ref, *, eps):
    @pl.when(pl.program_id(1) == 0)
    def _():
        acc_ref[...] = jnp.zeros_like(acc_ref)

    acc_ref[...] += jnp.dot(x_ref[...], w_ref[...],
                            preferred_element_type=jnp.float32)

    @pl.when(pl.program_id(1) == pl.num_programs(1) - 1)
    def _():
        y = acc_ref[...] + b_ref[...]                      # conv bias
        mu = jnp.mean(y, axis=-1, keepdims=True)           # LayerNorm epilogue
        var = jnp.mean((y - mu) ** 2, axis=-1, keepdims=True)
        yn = (y - mu) * jax.lax.rsqrt(var + eps)
        o_ref[...] = (yn * g_ref[...] + beta_ref[...]).astype(o_ref.dtype)


def linear_layernorm(x, w, b, gamma, beta, eps=1e-5):
    """Fused (x @ w + b) -> LayerNorm(channel).  LN needs the full Nout row, so
    only M and K are tiled (Nout = C is small in PVT)."""
    M, K = x.shape
    Nout = w.shape[1]
    tm = _pick_m_tile(M)
    tk = _pick_lane_tile(K)
    grid = (M // tm, K // tk)
    return pl.pallas_call(
        functools.partial(_linear_ln_kernel, eps=eps),
        out_shape=jax.ShapeDtypeStruct((M, Nout), x.dtype),
        grid=grid,
        in_specs=[
            pl.BlockSpec((tm, tk), lambda i, k: (i, k)),
            pl.BlockSpec((tk, Nout), lambda i, k: (k, 0)),
            pl.BlockSpec((1, Nout), lambda i, k: (0, 0)),
            pl.BlockSpec((1, Nout), lambda i, k: (0, 0)),
            pl.BlockSpec((1, Nout), lambda i, k: (0, 0)),
        ],
        out_specs=pl.BlockSpec((tm, Nout), lambda i, k: (i, 0)),
        scratch_shapes=[pltpu.VMEM((tm, Nout), jnp.float32)],
        compiler_params=pltpu.CompilerParams(
            dimension_semantics=("parallel", "arbitrary"),
            vmem_limit_bytes=_VMEM_LIMIT),
    )(x, w, b.reshape(1, Nout), gamma.reshape(1, Nout), beta.reshape(1, Nout))


def _attn_kernel(q_ref, kv_ref, o_ref, *, num_heads, scale):
    # One batch element per grid step; all heads handled inside the kernel.
    # q_ref: (N, C) in natural projection layout (head-major within C).
    # kv_ref: (Nkv, 2C) straight out of the kv projection: [:, :C] = k, [:, C:] = v.
    N, C = q_ref.shape
    hd = C // num_heads
    q = q_ref[...].astype(jnp.float32)
    kv = kv_ref[...].astype(jnp.float32)

    head_outs = []
    for h in range(num_heads):            # static unroll over heads
        qh = q[:, h * hd:(h + 1) * hd]                         # (N, hd)
        kh = kv[:, h * hd:(h + 1) * hd]                        # (Nkv, hd)
        vh = kv[:, C + h * hd:C + (h + 1) * hd]                # (Nkv, hd)
        # contract head_dim directly (no k.T materialization)
        s = jax.lax.dot_general(qh, kh, (((1,), (1,)), ((), ())),
                                preferred_element_type=jnp.float32) * scale
        m = jnp.max(s, axis=-1, keepdims=True)
        p = jnp.exp(s - m)
        l = jnp.sum(p, axis=-1, keepdims=True)
        p = p * pl.reciprocal(l, approx=True)                  # EUP divide
        oh = jnp.dot(p, vh, preferred_element_type=jnp.float32)
        head_outs.append(oh)

    # one lane-dense (N, C) store; memory order matches (head, hd) interleaving,
    # so this IS the (attn @ v).transpose(1, 2).reshape(B, N, C) layout.
    o_ref[...] = jnp.concatenate(head_outs, axis=-1).astype(o_ref.dtype)


def attention_core(q, kv, scale, num_heads):
    """q: (B, N, C), kv: (B, Nkv, 2C) -> (B, N, C) (already head-merged layout)."""
    B, N, C = q.shape
    Nkv = kv.shape[1]
    return pl.pallas_call(
        functools.partial(_attn_kernel, num_heads=num_heads, scale=scale),
        out_shape=jax.ShapeDtypeStruct((B, N, C), q.dtype),
        grid=(B,),
        in_specs=[
            pl.BlockSpec((None, N, C), lambda b: (b, 0, 0)),
            pl.BlockSpec((None, Nkv, 2 * C), lambda b: (b, 0, 0)),
        ],
        out_specs=pl.BlockSpec((None, N, C), lambda b: (b, 0, 0)),
        compiler_params=pltpu.CompilerParams(
            dimension_semantics=("parallel",),
            vmem_limit_bytes=_VMEM_LIMIT),
    )(q, kv)


# ------------------------------ module forward ----------------------------- #

def attention_forward(x, H, W, params, *, num_heads, sr_ratio):
    B, N, C = x.shape
    hd = C // num_heads
    scale = hd ** (-0.5)

    xf = x.reshape(B * N, C)

    # q = self.q(x)  -> kept in (B, N, C) head-major layout (no transpose needed)
    q = linear(xf, params["q_w"], params["q_b"]).reshape(B, N, C)

    if sr_ratio > 1:
        # x_ = self.norm(self.sr(x.permute(0,2,1).reshape(B,C,H,W)).reshape(B,C,-1).permute(0,2,1))
        # conv(k=sr, s=sr) as patchify + matmul, with LayerNorm fused in the epilogue.
        Hp, Wp = H // sr_ratio, W // sr_ratio
        Nkv = Hp * Wp
        xs = x.reshape(B, H, W, C)
        xs = xs.reshape(B, Hp, sr_ratio, Wp, sr_ratio, C)
        xs = xs.transpose(0, 1, 3, 2, 4, 5)                   # (B, Hp, Wp, sr, sr, C)
        xs = xs.reshape(B * Nkv, sr_ratio * sr_ratio * C)
        kv_in = linear_layernorm(xs, params["sr_w"], params["sr_b"],
                                 params["ln_g"], params["ln_b"])
    else:
        Nkv = N
        kv_in = xf

    # kv = self.kv(...)  -> (B, Nkv, 2C); first C cols = k, last C cols = v
    kv = linear(kv_in, params["kv_w"], params["kv_b"]).reshape(B, Nkv, 2 * C)

    # softmax(q k^T * scale) v   (attn_drop identity at p=0.0), lane-dense output
    o = attention_core(q, kv, scale, num_heads)               # (B, N, C)

    # x = self.proj(x)   (proj_drop identity at p=0.0)
    out = linear(o.reshape(B * N, C), params["proj_w"], params["proj_b"])
    return out.reshape(B, N, C)


# --------------------------- pure-JAX reference ---------------------------- #

def reference_forward(x, H, W, params, conv_w, conv_b, *, num_heads, sr_ratio):
    B, N, C = x.shape
    hd = C // num_heads
    scale = hd ** (-0.5)
    q = (x @ params["q_w"] + params["q_b"]).reshape(B, N, num_heads, hd).transpose(0, 2, 1, 3)
    if sr_ratio > 1:
        x_img = x.transpose(0, 2, 1).reshape(B, C, H, W)
        x_ = jax.lax.conv_general_dilated(
            x_img, conv_w, window_strides=(sr_ratio, sr_ratio), padding="VALID",
            dimension_numbers=("NCHW", "OIHW", "NCHW"))
        x_ = x_ + conv_b.reshape(1, C, 1, 1)
        x_ = x_.reshape(B, C, -1).transpose(0, 2, 1)
        mu = x_.mean(-1, keepdims=True)
        var = ((x_ - mu) ** 2).mean(-1, keepdims=True)
        x_ = (x_ - mu) / jnp.sqrt(var + 1e-5) * params["ln_g"] + params["ln_b"]
    else:
        x_ = x
    kv = (x_ @ params["kv_w"] + params["kv_b"]).reshape(B, -1, 2, num_heads, hd)
    kv = kv.transpose(2, 0, 3, 1, 4)
    k, v = kv[0], kv[1]
    attn = jnp.einsum("bhnd,bhmd->bhnm", q, k) * scale
    attn = jax.nn.softmax(attn, axis=-1)
    o = jnp.einsum("bhnm,bhmd->bhnd", attn, v).transpose(0, 2, 1, 3).reshape(B, N, C)
    return o @ params["proj_w"] + params["proj_b"]


# ---------------------------------- main ------------------------------------ #

if __name__ == "__main__":
    # small, module-consistent shapes
    B, C, num_heads = 2, 32, 4
    H = W = 8
    N = H * W
    sr_ratio = 2

    key = jax.random.PRNGKey(0)
    ks = jax.random.split(key, 10)
    init = lambda k, shape: (0.02 * jax.random.normal(k, shape)).astype(jnp.float32)

    # qkv_bias=False -> zero bias for q/kv; proj has bias; conv + LayerNorm for sr_ratio>1.
    conv_w = init(ks[0], (C, C, sr_ratio, sr_ratio))          # torch Conv2d weight (O, I, kh, kw)
    conv_b = init(ks[1], (C,))
    params = {
        "q_w": init(ks[2], (C, C)),                           # (in, out) layout
        "q_b": jnp.zeros((C,), jnp.float32),
        "kv_w": init(ks[3], (C, 2 * C)),
        "kv_b": jnp.zeros((2 * C,), jnp.float32),
        "proj_w": init(ks[4], (C, C)),
        "proj_b": init(ks[5], (C,)),
        # conv as matmul: rows ordered (kh, kw, c_in) to match the patchify layout
        "sr_w": conv_w.transpose(2, 3, 1, 0).reshape(sr_ratio * sr_ratio * C, C),
        "sr_b": conv_b,
        "ln_g": (1.0 + 0.02 * jax.random.normal(ks[7], (C,))).astype(jnp.float32),
        "ln_b": init(ks[8], (C,)),
    }

    x = jax.random.normal(ks[6], (B, N, C), dtype=jnp.float32)

    fwd = jax.jit(functools.partial(attention_forward, num_heads=num_heads),
                  static_argnums=(1, 2), static_argnames=("sr_ratio",))

    # sr_ratio > 1 path (spatial reduction conv + fused LayerNorm)
    out2 = jax.block_until_ready(fwd(x, H, W, params, sr_ratio=2))
    ref2 = jax.block_until_ready(
        reference_forward(x, H, W, params, conv_w, conv_b, num_heads=num_heads, sr_ratio=2))
    err2 = float(jnp.max(jnp.abs(out2 - ref2)))

    # sr_ratio == 1 path (plain multi-head self-attention)
    out1 = jax.block_until_ready(fwd(x, H, W, params, sr_ratio=1))
    ref1 = jax.block_until_ready(
        reference_forward(x, H, W, params, conv_w, conv_b, num_heads=num_heads, sr_ratio=1))
    err1 = float(jnp.max(jnp.abs(out1 - ref1)))

    assert out2.shape == (B, N, C) and out2.dtype == jnp.float32
    assert out1.shape == (B, N, C) and out1.dtype == jnp.float32
    assert err2 < 1e-3, f"sr=2 mismatch vs reference: {err2}"
    assert err1 < 1e-3, f"sr=1 mismatch vs reference: {err1}"

    print("KERNEL_OK")
</pallas_src>

<mosaic_0001>
module attributes {stable_mosaic.version = 11 : i64} {
  func.func @_linear_ln_kernel(%arg0: i32, %arg1: i32, %arg2: memref<16x128xf32, #tpu.memory_space<vmem>>, %arg3: memref<128x32xf32, #tpu.memory_space<vmem>>, %arg4: memref<1x32xf32, #tpu.memory_space<vmem>>, %arg5: memref<1x32xf32, #tpu.memory_space<vmem>>, %arg6: memref<1x32xf32, #tpu.memory_space<vmem>>, %arg7: memref<16x32xf32, #tpu.memory_space<vmem>>, %arg8: memref<16x32xf32, #tpu.memory_space<vmem>>) attributes {dimension_semantics = [#tpu.dimension_semantics<parallel>, #tpu.dimension_semantics<arbitrary>], iteration_bounds = array<i64: 2, 1>, scalar_prefetch = 0 : i64, scratch_operands = 1 : i64, tpu.core_type = #tpu.core_type<tc>, window_params = [{transform_indices = @transform_0, window_bounds = array<i64: 16, 128>}, {transform_indices = @transform_1, window_bounds = array<i64: 128, 32>}, {pipeline_mode = #tpu.pipeline_mode<synchronous>, transform_indices = @transform_2, window_bounds = array<i64: 1, 32>}, {pipeline_mode = #tpu.pipeline_mode<synchronous>, transform_indices = @transform_3, window_bounds = array<i64: 1, 32>}, {pipeline_mode = #tpu.pipeline_mode<synchronous>, transform_indices = @transform_4, window_bounds = array<i64: 1, 32>}, {transform_indices = @transform_5, window_bounds = array<i64: 16, 32>}]} {
    %c0_i32 = arith.constant 0 : i32
    %0 = arith.cmpi eq, %arg1, %c0_i32 : i32
    %1 = arith.extui %0 : i1 to i32
    %c0_i32_0 = arith.constant 0 : i32
    %2 = arith.cmpi ne, %1, %c0_i32_0 : i32
    scf.if %2 {
      %cst_10 = arith.constant 0.000000e+00 : f32
      %12 = vector.broadcast %cst_10 : f32 to vector<16x32xf32>
      %c0_11 = arith.constant 0 : index
      %c0_12 = arith.constant 0 : index
      %13 = vector.load %arg8[%c0_11, %c0_12] : memref<16x32xf32, #tpu.memory_space<vmem>>, vector<16x32xf32>
      tpu.vector_store %arg8[%c0_11, %c0_12], %12 {strides = array<i32>} : memref<16x32xf32, #tpu.memory_space<vmem>>, vector<16x32xf32>,
    } else {
    }
    %c0 = arith.constant 0 : index
    %c0_1 = arith.constant 0 : index
    %3 = vector.load %arg8[%c0, %c0_1] : memref<16x32xf32, #tpu.memory_space<vmem>>, vector<16x32xf32>
    %c0_2 = arith.constant 0 : index
    %c0_3 = arith.constant 0 : index
    %4 = vector.load %arg2[%c0_2, %c0_3] : memref<16x128xf32, #tpu.memory_space<vmem>>, vector<16x128xf32>
    %c0_4 = arith.constant 0 : index
    %c0_5 = arith.constant 0 : index
    %5 = vector.load %arg3[%c0_4, %c0_5] : memref<128x32xf32, #tpu.memory_space<vmem>>, vector<128x32xf32>
    %cst = arith.constant dense<0.000000e+00> : vector<16x32xf32>
    %6 = tpu.matmul %4, %5, %cst {dimension_numbers = #tpu.dot_dimension_numbers<[1], [0], [0], [1], [0, 0, 1, 1], [], []>} : vector<16x128xf32>, vector<128x32xf32>, vector<16x32xf32> -> vector<16x32xf32>
    %7 = arith.addf %3, %6 : vector<16x32xf32>
    %c0_6 = arith.constant 0 : index
    %c0_7 = arith.constant 0 : index
    %8 = vector.load %arg8[%c0_6, %c0_7] : memref<16x32xf32, #tpu.memory_space<vmem>>, vector<16x32xf32>
    tpu.vector_store %arg8[%c0_6, %c0_7], %7 {strides = array<i32>} : memref<16x32xf32, #tpu.memory_space<vmem>>, vector<16x32xf32>,
    %c0_i32_8 = arith.constant 0 : i32
    %9 = arith.cmpi eq, %arg1, %c0_i32_8 : i32
    %10 = arith.extui %9 : i1 to i32
    %c0_i32_9 = arith.constant 0 : i32
    %11 = arith.cmpi ne, %10, %c0_i32_9 : i32
    scf.if %11 {
      %c0_10 = arith.constant 0 : index
      %c0_11 = arith.constant 0 : index
      %12 = vector.load %arg8[%c0_10, %c0_11] : memref<16x32xf32, #tpu.memory_space<vmem>>, vector<16x32xf32>
      %c0_12 = arith.constant 0 : index
      %c0_13 = arith.constant 0 : index
      %13 = vector.load %arg4[%c0_12, %c0_13] : memref<1x32xf32, #tpu.memory_space<vmem>>, vector<1x32xf32>
      %14 = vector.broadcast %13 : vector<1x32xf32> to vector<16x32xf32>
      %15 = arith.addf %12, %14 : vector<16x32xf32>
      %cst_14 = arith.constant dense<0.000000e+00> : vector<16xf32>
      %16 = vector.multi_reduction <add>, %15, %cst_14 [1] : vector<16x32xf32> to vector<16xf32>
      %17 = vector.shape_cast %16 : vector<16xf32> to vector<16x1xf32>
      %cst_15 = arith.constant 3.200000e+01 : f32
      %18 = vector.broadcast %cst_15 : f32 to vector<16x1xf32>
      %19 = arith.divf %17, %18 : vector<16x1xf32>
      %20 = vector.broadcast %19 : vector<16x1xf32> to vector<16x32xf32>
      %21 = arith.subf %15, %20 : vector<16x32xf32>
      %22 = arith.mulf %21, %21 : vector<16x32xf32>
      %cst_16 = arith.constant dense<0.000000e+00> : vector<16xf32>
      %23 = vector.multi_reduction <add>, %22, %cst_16 [1] : vector<16x32xf32> to vector<16xf32>
      %24 = vector.shape_cast %23 : vector<16xf32> to vector<16x1xf32>
      %cst_17 = arith.constant 3.200000e+01 : f32
      %25 = vector.broadcast %cst_17 : f32 to vector<16x1xf32>
      %26 = arith.divf %24, %25 : vector<16x1xf32>
      %27 = vector.broadcast %19 : vector<16x1xf32> to vector<16x32xf32>
      %28 = arith.subf %15, %27 : vector<16x32xf32>
      %cst_18 = arith.constant 9.99999974E-6 : f32
      %29 = vector.broadcast %cst_18 : f32 to vector<16x1xf32>
      %30 = arith.addf %26, %29 : vector<16x1xf32>
      %31 = math.rsqrt %30 : vector<16x1xf32>
      %32 = vector.broadcast %31 : vector<16x1xf32> to vector<16x32xf32>
      %33 = arith.mulf %28, %32 : vector<16x32xf32>
      %c0_19 = arith.constant 0 : index
      %c0_20 = arith.constant 0 : index
      %34 = vector.load %arg5[%c0_19, %c0_20] : memref<1x32xf32, #tpu.memory_space<vmem>>, vector<1x32xf32>
      %35 = vector.broadcast %34 : vector<1x32xf32> to vector<16x32xf32>
      %36 = arith.mulf %33, %35 : vector<16x32xf32>
      %c0_21 = arith.constant 0 : index
      %c0_22 = arith.constant 0 : index
      %37 = vector.load %arg6[%c0_21, %c0_22] : memref<1x32xf32, #tpu.memory_space<vmem>>, vector<1x32xf32>
      %38 = vector.broadcast %37 : vector<1x32xf32> to vector<16x32xf32>
      %39 = arith.addf %36, %38 : vector<16x32xf32>
      %c0_23 = arith.constant 0 : index
      %c0_24 = arith.constant 0 : index
      %40 = vector.load %arg7[%c0_23, %c0_24] : memref<16x32xf32, #tpu.memory_space<vmem>>, vector<16x32xf32>
      tpu.vector_store %arg7[%c0_23, %c0_24], %39 {strides = array<i32>} : memref<16x32xf32, #tpu.memory_space<vmem>>, vector<16x32xf32>,
    } else {
    }
    return
  }
  func.func @transform_0(%arg0: i32, %arg1: i32) -> (i32, i32) {
    %c0_i32 = arith.constant 0 : i32
    return %arg0, %arg1 : i32, i32
  }
  func.func @transform_1(%arg0: i32, %arg1: i32) -> (i32, i32) {
    %c0_i32 = arith.constant 0 : i32
    %c0_i32_0 = arith.constant 0 : i32
    return %arg1, %c0_i32 : i32, i32
  }
  func.func @transform_2(%arg0: i32, %arg1: i32) -> (i32, i32) {
    %c0_i32 = arith.constant 0 : i32
    %c0_i32_0 = arith.constant 0 : i32
    %c0_i32_1 = arith.constant 0 : i32
    return %c0_i32, %c0_i32_0 : i32, i32
  }
  func.func @transform_3(%arg0: i32, %arg1: i32) -> (i32, i32) {
    %c0_i32 = arith.constant 0 : i32
    %c0_i32_0 = arith.constant 0 : i32
    %c0_i32_1 = arith.constant 0 : i32
    return %c0_i32, %c0_i32_0 : i32, i32
  }
  func.func @transform_4(%arg0: i32, %arg1: i32) -> (i32, i32) {
    %c0_i32 = arith.constant 0 : i32
    %c0_i32_0 = arith.constant 0 : i32
    %c0_i32_1 = arith.constant 0 : i32
    return %c0_i32, %c0_i32_0 : i32, i32
  }
  func.func @transform_5(%arg0: i32, %arg1: i32) -> (i32, i32) {
    %c0_i32 = arith.constant 0 : i32
    %c0_i32_0 = arith.constant 0 : i32
    return %arg0, %c0_i32 : i32, i32
  }
}

module attributes {stable_mosaic.version = 11 : i64} {
  func.func @_linear_kernel(%arg0: i32, %arg1: i32, %arg2: i32, %arg3: memref<64x32xf32, #tpu.memory_space<vmem>>, %arg4: memref<32x32xf32, #tpu.memory_space<vmem>>, %arg5: memref<1x32xf32, #tpu.memory_space<vmem>>, %arg6: memref<64x32xf32, #tpu.memory_space<vmem>>, %arg7: memref<64x32xf32, #tpu.memory_space<vmem>>) attributes {dimension_semantics = [#tpu.dimension_semantics<parallel>, #tpu.dimension_semantics<parallel>, #tpu.dimension_semantics<arbitrary>], iteration_bounds = array<i64: 2, 1, 1>, scalar_prefetch = 0 : i64, scratch_operands = 1 : i64, tpu.core_type = #tpu.core_type<tc>, window_params = [{transform_indices = @transform_0, window_bounds = array<i64: 64, 32>}, {transform_indices = @transform_1, window_bounds = array<i64: 32, 32>}, {transform_indices = @transform_2, window_bounds = array<i64: 1, 32>}, {transform_indices = @transform_3, window_bounds = array<i64: 64, 32>}]} {
    %c0_i32 = arith.constant 0 : i32
    %0 = arith.cmpi eq, %arg2, %c0_i32 : i32
    %1 = arith.extui %0 : i1 to i32
    %c0_i32_0 = arith.constant 0 : i32
    %2 = arith.cmpi ne, %1, %c0_i32_0 : i32
    scf.if %2 {
      %cst_10 = arith.constant 0.000000e+00 : f32
      %12 = vector.broadcast %cst_10 : f32 to vector<64x32xf32>
      %c0_11 = arith.constant 0 : index
      %c0_12 = arith.constant 0 : index
      %13 = vector.load %arg7[%c0_11, %c0_12] : memref<64x32xf32, #tpu.memory_space<vmem>>, vector<64x32xf32>
      tpu.vector_store %arg7[%c0_11, %c0_12], %12 {strides = array<i32>} : memref<64x32xf32, #tpu.memory_space<vmem>>, vector<64x32xf32>,
    } else {
    }
    %c0 = arith.constant 0 : index
    %c0_1 = arith.constant 0 : index
    %3 = vector.load %arg7[%c0, %c0_1] : memref<64x32xf32, #tpu.memory_space<vmem>>, vector<64x32xf32>
    %c0_2 = arith.constant 0 : index
    %c0_3 = arith.constant 0 : index
    %4 = vector.load %arg3[%c0_2, %c0_3] : memref<64x32xf32, #tpu.memory_space<vmem>>, vector<64x32xf32>
    %c0_4 = arith.constant 0 : index
    %c0_5 = arith.constant 0 : index
    %5 = vector.load %arg4[%c0_4, %c0_5] : memref<32x32xf32, #tpu.memory_space<vmem>>, vector<32x32xf32>
    %cst = arith.constant dense<0.000000e+00> : vector<64x32xf32>
    %6 = tpu.matmul %4, %5, %cst {dimension_numbers = #tpu.dot_dimension_numbers<[1], [0], [0], [1], [0, 0, 1, 1], [], []>} : vector<64x32xf32>, vector<32x32xf32>, vector<64x32xf32> -> vector<64x32xf32>
    %7 = arith.addf %3, %6 : vector<64x32xf32>
    %c0_6 = arith.constant 0 : index
    %c0_7 = arith.constant 0 : index
    %8 = vector.load %arg7[%c0_6, %c0_7] : memref<64x32xf32, #tpu.memory_space<vmem>>, vector<64x32xf32>
    tpu.vector_store %arg7[%c0_6, %c0_7], %7 {strides = array<i32>} : memref<64x32xf32, #tpu.memory_space<vmem>>, vector<64x32xf32>,
    %c0_i32_8 = arith.constant 0 : i32
    %9 = arith.cmpi eq, %arg2, %c0_i32_8 : i32
    %10 = arith.extui %9 : i1 to i32
    %c0_i32_9 = arith.constant 0 : i32
    %11 = arith.cmpi ne, %10, %c0_i32_9 : i32
    scf.if %11 {
      %c0_10 = arith.constant 0 : index
      %c0_11 = arith.constant 0 : index
      %12 = vector.load %arg7[%c0_10, %c0_11] : memref<64x32xf32, #tpu.memory_space<vmem>>, vector<64x32xf32>
      %c0_12 = arith.constant 0 : index
      %c0_13 = arith.constant 0 : index
      %13 = vector.load %arg5[%c0_12, %c0_13] : memref<1x32xf32, #tpu.memory_space<vmem>>, vector<1x32xf32>
      %14 = vector.broadcast %13 : vector<1x32xf32> to vector<64x32xf32>
      %15 = arith.addf %12, %14 : vector<64x32xf32>
      %c0_14 = arith.constant 0 : index
      %c0_15 = arith.constant 0 : index
      %16 = vector.load %arg6[%c0_14, %c0_15] : memref<64x32xf32, #tpu.memory_space<vmem>>, vector<64x32xf32>
      tpu.vector_store %arg6[%c0_14, %c0_15], %15 {strides = array<i32>} : memref<64x32xf32, #tpu.memory_space<vmem>>, vector<64x32xf32>,
    } else {
    }
    return
  }
  func.func @transform_0(%arg0: i32, %arg1: i32, %arg2: i32) -> (i32, i32) {
    %c0_i32 = arith.constant 0 : i32
    return %arg0, %arg2 : i32, i32
  }
  func.func @transform_1(%arg0: i32, %arg1: i32, %arg2: i32) -> (i32, i32) {
    %c0_i32 = arith.constant 0 : i32
    return %arg2, %arg1 : i32, i32
  }
  func.func @transform_2(%arg0: i32, %arg1: i32, %arg2: i32) -> (i32, i32) {
    %c0_i32 = arith.constant 0 : i32
    %c0_i32_0 = arith.constant 0 : i32
    return %c0_i32, %arg1 : i32, i32
  }
  func.func @transform_3(%arg0: i32, %arg1: i32, %arg2: i32) -> (i32, i32) {
    %c0_i32 = arith.constant 0 : i32
    return %arg0, %arg1 : i32, i32
  }
}

module attributes {stable_mosaic.version = 11 : i64} {
  func.func @_attn_kernel(%arg0: i32, %arg1: memref<1x64x32xf32, #tpu.memory_space<vmem>>, %arg2: memref<1x16x64xf32, #tpu.memory_space<vmem>>, %arg3: memref<1x64x32xf32, #tpu.memory_space<vmem>>) attributes {dimension_semantics = [#tpu.dimension_semantics<parallel>], iteration_bounds = array<i64: 2>, scalar_prefetch = 0 : i64, scratch_operands = 0 : i64, tpu.core_type = #tpu.core_type<tc>, window_params = [{transform_indices = @transform_0, window_bounds = array<i64: 1, 64, 32>}, {transform_indices = @transform_1, window_bounds = array<i64: 1, 16, 64>}, {transform_indices = @transform_2, window_bounds = array<i64: 1, 64, 32>}]} {
    %c0 = arith.constant 0 : index
    %c0_0 = arith.constant 0 : index
    %c0_1 = arith.constant 0 : index
    %0 = vector.load %arg1[%c0, %c0_0, %c0_1] : memref<1x64x32xf32, #tpu.memory_space<vmem>>, vector<1x64x32xf32>
    %1 = vector.shape_cast %0 : vector<1x64x32xf32> to vector<64x32xf32>
    %c0_2 = arith.constant 0 : index
    %c0_3 = arith.constant 0 : index
    %c0_4 = arith.constant 0 : index
    %2 = vector.load %arg2[%c0_2, %c0_3, %c0_4] : memref<1x16x64xf32, #tpu.memory_space<vmem>>, vector<1x16x64xf32>
    %3 = vector.shape_cast %2 : vector<1x16x64xf32> to vector<16x64xf32>
    %4 = vector.extract_strided_slice %1 {offsets = [0, 0], sizes = [64, 8], strides = [1, 1]} : vector<64x32xf32> to vector<64x8xf32>
    %5 = vector.extract_strided_slice %3 {offsets = [0, 0], sizes = [16, 8], strides = [1, 1]} : vector<16x64xf32> to vector<16x8xf32>
    %6 = vector.extract_strided_slice %3 {offsets = [0, 32], sizes = [16, 8], strides = [1, 1]} : vector<16x64xf32> to vector<16x8xf32>
    %cst = arith.constant dense<0.000000e+00> : vector<64x16xf32>
    %7 = tpu.matmul %4, %5, %cst {dimension_numbers = #tpu.dot_dimension_numbers<[1], [1], [0], [0], [0, 0, 1, 0], [], []>} : vector<64x8xf32>, vector<16x8xf32>, vector<64x16xf32> -> vector<64x16xf32>
    %cst_5 = arith.constant 0.353553385 : f32
    %8 = vector.broadcast %cst_5 : f32 to vector<64x16xf32>
    %9 = arith.mulf %7, %8 : vector<64x16xf32>
    %cst_6 = arith.constant dense<0xFF800000> : vector<64xf32>
    %10 = vector.multi_reduction <maximumf>, %9, %cst_6 [1] : vector<64x16xf32> to vector<64xf32>
    %11 = vector.shape_cast %10 : vector<64xf32> to vector<64x1xf32>
    %12 = vector.broadcast %11 : vector<64x1xf32> to vector<64x16xf32>
    %13 = arith.subf %9, %12 : vector<64x16xf32>
    %14 = math.exp %13 : vector<64x16xf32>
    %cst_7 = arith.constant dense<0.000000e+00> : vector<64xf32>
    %15 = vector.multi_reduction <add>, %14, %cst_7 [1] : vector<64x16xf32> to vector<64xf32>
    %16 = vector.shape_cast %15 : vector<64xf32> to vector<64x1xf32>
    %17 = tpu.reciprocal %16 {approx = true} : vector<64x1xf32> -> vector<64x1xf32>
    %18 = vector.broadcast %17 : vector<64x1xf32> to vector<64x16xf32>
    %19 = arith.mulf %14, %18 : vector<64x16xf32>
    %cst_8 = arith.constant dense<0.000000e+00> : vector<64x8xf32>
    %20 = tpu.matmul %19, %6, %cst_8 {dimension_numbers = #tpu.dot_dimension_numbers<[1], [0], [0], [1], [0, 0, 1, 1], [], []>} : vector<64x16xf32>, vector<16x8xf32>, vector<64x8xf32> -> vector<64x8xf32>
    %21 = vector.extract_strided_slice %1 {offsets = [0, 8], sizes = [64, 8], strides = [1, 1]} : vector<64x32xf32> to vector<64x8xf32>
    %22 = vector.extract_strided_slice %3 {offsets = [0, 8], sizes = [16, 8], strides = [1, 1]} : vector<16x64xf32> to vector<16x8xf32>
    %23 = vector.extract_strided_slice %3 {offsets = [0, 40], sizes = [16, 8], strides = [1, 1]} : vector<16x64xf32> to vector<16x8xf32>
    %cst_9 = arith.constant dense<0.000000e+00> : vector<64x16xf32>
    %24 = tpu.matmul %21, %22, %cst_9 {dimension_numbers = #tpu.dot_dimension_numbers<[1], [1], [0], [0], [0, 0, 1, 0], [], []>} : vector<64x8xf32>, vector<16x8xf32>, vector<64x16xf32> -> vector<64x16xf32>
    %cst_10 = arith.constant 0.353553385 : f32
    %25 = vector.broadcast %cst_10 : f32 to vector<64x16xf32>
    %26 = arith.mulf %24, %25 : vector<64x16xf32>
    %cst_11 = arith.constant dense<0xFF800000> : vector<64xf32>
    %27 = vector.multi_reduction <maximumf>, %26, %cst_11 [1] : vector<64x16xf32> to vector<64xf32>
    %28 = vector.shape_cast %27 : vector<64xf32> to vector<64x1xf32>
    %29 = vector.broadcast %28 : vector<64x1xf32> to vector<64x16xf32>
    %30 = arith.subf %26, %29 : vector<64x16xf32>
    %31 = math.exp %30 : vector<64x16xf32>
    %cst_12 = arith.constant dense<0.000000e+00> : vector<64xf32>
    %32 = vector.multi_reduction <add>, %31, %cst_12 [1] : vector<64x16xf32> to vector<64xf32>
    %33 = vector.shape_cast %32 : vector<64xf32> to vector<64x1xf32>
    %34 = tpu.reciprocal %33 {approx = true} : vector<64x1xf32> -> vector<64x1xf32>
    %35 = vector.broadcast %34 : vector<64x1xf32> to vector<64x16xf32>
    %36 = arith.mulf %31, %35 : vector<64x16xf32>
    %cst_13 = arith.constant dense<0.000000e+00> : vector<64x8xf32>
    %37 = tpu.matmul %36, %23, %cst_13 {dimension_numbers = #tpu.dot_dimension_numbers<[1], [0], [0], [1], [0, 0, 1, 1], [], []>} : vector<64x16xf32>, vector<16x8xf32>, vector<64x8xf32> -> vector<64x8xf32>
    %38 = vector.extract_strided_slice %1 {offsets = [0, 16], sizes = [64, 8], strides = [1, 1]} : vector<64x32xf32> to vector<64x8xf32>
    %39 = vector.extract_strided_slice %3 {offsets = [0, 16], sizes = [16, 8], strides = [1, 1]} : vector<16x64xf32> to vector<16x8xf32>
    %40 = vector.extract_strided_slice %3 {offsets = [0, 48], sizes = [16, 8], strides = [1, 1]} : vector<16x64xf32> to vector<16x8xf32>
    %cst_14 = arith.constant dense<0.000000e+00> : vector<64x16xf32>
    %41 = tpu.matmul %38, %39, %cst_14 {dimension_numbers = #tpu.dot_dimension_numbers<[1], [1], [0], [0], [0, 0, 1, 0], [], []>} : vector<64x8xf32>, vector<16x8xf32>, vector<64x16xf32> -> vector<64x16xf32>
    %cst_15 = arith.constant 0.353553385 : f32
    %42 = vector.broadcast %cst_15 : f32 to vector<64x16xf32>
    %43 = arith.mulf %41, %42 : vector<64x16xf32>
    %cst_16 = arith.constant dense<0xFF800000> : vector<64xf32>
    %44 = vector.multi_reduction <maximumf>, %43, %cst_16 [1] : vector<64x16xf32> to vector<64xf32>
    %45 = vector.shape_cast %44 : vector<64xf32> to vector<64x1xf32>
    %46 = vector.broadcast %45 : vector<64x1xf32> to vector<64x16xf32>
    %47 = arith.subf %43, %46 : vector<64x16xf32>
    %48 = math.exp %47 : vector<64x16xf32>
    %cst_17 = arith.constant dense<0.000000e+00> : vector<64xf32>
    %49 = vector.multi_reduction <add>, %48, %cst_17 [1] : vector<64x16xf32> to vector<64xf32>
    %50 = vector.shape_cast %49 : vector<64xf32> to vector<64x1xf32>
    %51 = tpu.reciprocal %50 {approx = true} : vector<64x1xf32> -> vector<64x1xf32>
    %52 = vector.broadcast %51 : vector<64x1xf32> to vector<64x16xf32>
    %53 = arith.mulf %48, %52 : vector<64x16xf32>
    %cst_18 = arith.constant dense<0.000000e+00> : vector<64x8xf32>
    %54 = tpu.matmul %53, %40, %cst_18 {dimension_numbers = #tpu.dot_dimension_numbers<[1], [0], [0], [1], [0, 0, 1, 1], [], []>} : vector<64x16xf32>, vector<16x8xf32>, vector<64x8xf32> -> vector<64x8xf32>
    %55 = vector.extract_strided_slice %1 {offsets = [0, 24], sizes = [64, 8], strides = [1, 1]} : vector<64x32xf32> to vector<64x8xf32>
    %56 = vector.extract_strided_slice %3 {offsets = [0, 24], sizes = [16, 8], strides = [1, 1]} : vector<16x64xf32> to vector<16x8xf32>
    %57 = vector.extract_strided_slice %3 {offsets = [0, 56], sizes = [16, 8], strides = [1, 1]} : vector<16x64xf32> to vector<16x8xf32>
    %cst_19 = arith.constant dense<0.000000e+00> : vector<64x16xf32>
    %58 = tpu.matmul %55, %56, %cst_19 {dimension_numbers = #tpu.dot_dimension_numbers<[1], [1], [0], [0], [0, 0, 1, 0], [], []>} : vector<64x8xf32>, vector<16x8xf32>, vector<64x16xf32> -> vector<64x16xf32>
    %cst_20 = arith.constant 0.353553385 : f32
    %59 = vector.broadcast %cst_20 : f32 to vector<64x16xf32>
    %60 = arith.mulf %58, %59 : vector<64x16xf32>
    %cst_21 = arith.constant dense<0xFF800000> : vector<64xf32>
    %61 = vector.multi_reduction <maximumf>, %60, %cst_21 [1] : vector<64x16xf32> to vector<64xf32>
    %62 = vector.shape_cast %61 : vector<64xf32> to vector<64x1xf32>
    %63 = vector.broadcast %62 : vector<64x1xf32> to vector<64x16xf32>
    %64 = arith.subf %60, %63 : vector<64x16xf32>
    %65 = math.exp %64 : vector<64x16xf32>
    %cst_22 = arith.constant dense<0.000000e+00> : vector<64xf32>
    %66 = vector.multi_reduction <add>, %65, %cst_22 [1] : vector<64x16xf32> to vector<64xf32>
    %67 = vector.shape_cast %66 : vector<64xf32> to vector<64x1xf32>
    %68 = tpu.reciprocal %67 {approx = true} : vector<64x1xf32> -> vector<64x1xf32>
    %69 = vector.broadcast %68 : vector<64x1xf32> to vector<64x16xf32>
    %70 = arith.mulf %65, %69 : vector<64x16xf32>
    %cst_23 = arith.constant dense<0.000000e+00> : vector<64x8xf32>
    %71 = tpu.matmul %70, %57, %cst_23 {dimension_numbers = #tpu.dot_dimension_numbers<[1], [0], [0], [1], [0, 0, 1, 1], [], []>} : vector<64x16xf32>, vector<16x8xf32>, vector<64x8xf32> -> vector<64x8xf32>
    %72 = tpu.concatenate %20, %37, %54, %71 in 1 : vector<64x8xf32>, vector<64x8xf32>, vector<64x8xf32>, vector<64x8xf32> -> vector<64x32xf32>
    %c0_24 = arith.constant 0 : index
    %c0_25 = arith.constant 0 : index
    %c0_26 = arith.constant 0 : index
    %73 = vector.load %arg3[%c0_24, %c0_25, %c0_26] : memref<1x64x32xf32, #tpu.memory_space<vmem>>, vector<1x64x32xf32>
    %74 = vector.shape_cast %73 : vector<1x64x32xf32> to vector<64x32xf32>
    %75 = vector.shape_cast %72 : vector<64x32xf32> to vector<1x64x32xf32>
    tpu.vector_store %arg3[%c0_24, %c0_25, %c0_26], %75 {strides = array<i32>} : memref<1x64x32xf32, #tpu.memory_space<vmem>>, vector<1x64x32xf32>,
    return
  }
  func.func @transform_0(%arg0: i32) -> (i32, i32, i32) {
    %c0_i32 = arith.constant 0 : i32
    %c0_i32_0 = arith.constant 0 : i32
    %c0_i32_1 = arith.constant 0 : i32
    return %arg0, %c0_i32, %c0_i32_0 : i32, i32, i32
  }
  func.func @transform_1(%arg0: i32) -> (i32, i32, i32) {
    %c0_i32 = arith.constant 0 : i32
    %c0_i32_0 = arith.constant 0 : i32
    %c0_i32_1 = arith.constant 0 : i32
    return %arg0, %c0_i32, %c0_i32_0 : i32, i32, i32
  }
  func.func @transform_2(%arg0: i32) -> (i32, i32, i32) {
    %c0_i32 = arith.constant 0 : i32
    %c0_i32_0 = arith.constant 0 : i32
    %c0_i32_1 = arith.constant 0 : i32
    return %arg0, %c0_i32, %c0_i32_0 : i32, i32, i32
  }
}

module attributes {stable_mosaic.version = 11 : i64} {
  func.func @_linear_kernel(%arg0: i32, %arg1: i32, %arg2: i32, %arg3: memref<16x32xf32, #tpu.memory_space<vmem>>, %arg4: memref<32x64xf32, #tpu.memory_space<vmem>>, %arg5: memref<1x64xf32, #tpu.memory_space<vmem>>, %arg6: memref<16x64xf32, #tpu.memory_space<vmem>>, %arg7: memref<16x64xf32, #tpu.memory_space<vmem>>) attributes {dimension_semantics = [#tpu.dimension_semantics<parallel>, #tpu.dimension_semantics<parallel>, #tpu.dimension_semantics<arbitrary>], iteration_bounds = array<i64: 2, 1, 1>, scalar_prefetch = 0 : i64, scratch_operands = 1 : i64, tpu.core_type = #tpu.core_type<tc>, window_params = [{transform_indices = @transform_0, window_bounds = array<i64: 16, 32>}, {transform_indices = @transform_1, window_bounds = array<i64: 32, 64>}, {transform_indices = @transform_2, window_bounds = array<i64: 1, 64>}, {transform_indices = @transform_3, window_bounds = array<i64: 16, 64>}]} {
    %c0_i32 = arith.constant 0 : i32
    %0 = arith.cmpi eq, %arg2, %c0_i32 : i32
    %1 = arith.extui %0 : i1 to i32
    %c0_i32_0 = arith.constant 0 : i32
    %2 = arith.cmpi ne, %1, %c0_i32_0 : i32
    scf.if %2 {
      %cst_10 = arith.constant 0.000000e+00 : f32
      %12 = vector.broadcast %cst_10 : f32 to vector<16x64xf32>
      %c0_11 = arith.constant 0 : index
      %c0_12 = arith.constant 0 : index
      %13 = vector.load %arg7[%c0_11, %c0_12] : memref<16x64xf32, #tpu.memory_space<vmem>>, vector<16x64xf32>
      tpu.vector_store %arg7[%c0_11, %c0_12], %12 {strides = array<i32>} : memref<16x64xf32, #tpu.memory_space<vmem>>, vector<16x64xf32>,
    } else {
    }
    %c0 = arith.constant 0 : index
    %c0_1 = arith.constant 0 : index
    %3 = vector.load %arg7[%c0, %c0_1] : memref<16x64xf32, #tpu.memory_space<vmem>>, vector<16x64xf32>
    %c0_2 = arith.constant 0 : index
    %c0_3 = arith.constant 0 : index
    %4 = vector.load %arg3[%c0_2, %c0_3] : memref<16x32xf32, #tpu.memory_space<vmem>>, vector<16x32xf32>
    %c0_4 = arith.constant 0 : index
    %c0_5 = arith.constant 0 : index
    %5 = vector.load %arg4[%c0_4, %c0_5] : memref<32x64xf32, #tpu.memory_space<vmem>>, vector<32x64xf32>
    %cst = arith.constant dense<0.000000e+00> : vector<16x64xf32>
    %6 = tpu.matmul %4, %5, %cst {dimension_numbers = #tpu.dot_dimension_numbers<[1], [0], [0], [1], [0, 0, 1, 1], [], []>} : vector<16x32xf32>, vector<32x64xf32>, vector<16x64xf32> -> vector<16x64xf32>
    %7 = arith.addf %3, %6 : vector<16x64xf32>
    %c0_6 = arith.constant 0 : index
    %c0_7 = arith.constant 0 : index
    %8 = vector.load %arg7[%c0_6, %c0_7] : memref<16x64xf32, #tpu.memory_space<vmem>>, vector<16x64xf32>
    tpu.vector_store %arg7[%c0_6, %c0_7], %7 {strides = array<i32>} : memref<16x64xf32, #tpu.memory_space<vmem>>, vector<16x64xf32>,
    %c0_i32_8 = arith.constant 0 : i32
    %9 = arith.cmpi eq, %arg2, %c0_i32_8 : i32
    %10 = arith.extui %9 : i1 to i32
    %c0_i32_9 = arith.constant 0 : i32
    %11 = arith.cmpi ne, %10, %c0_i32_9 : i32
    scf.if %11 {
      %c0_10 = arith.constant 0 : index
      %c0_11 = arith.constant 0 : index
      %12 = vector.load %arg7[%c0_10, %c0_11] : memref<16x64xf32, #tpu.memory_space<vmem>>, vector<16x64xf32>
      %c0_12 = arith.constant 0 : index
      %c0_13 = arith.constant 0 : index
      %13 = vector.load %arg5[%c0_12, %c0_13] : memref<1x64xf32, #tpu.memory_space<vmem>>, vector<1x64xf32>
      %14 = vector.broadcast %13 : vector<1x64xf32> to vector<16x64xf32>
      %15 = arith.addf %12, %14 : vector<16x64xf32>
      %c0_14 = arith.constant 0 : index
      %c0_15 = arith.constant 0 : index
      %16 = vector.load %arg6[%c0_14, %c0_15] : memref<16x64xf32, #tpu.memory_space<vmem>>, vector<16x64xf32>
      tpu.vector_store %arg6[%c0_14, %c0_15], %15 {strides = array<i32>} : memref<16x64xf32, #tpu.memory_space<vmem>>, vector<16x64xf32>,
    } else {
    }
    return
  }
  func.func @transform_0(%arg0: i32, %arg1: i32, %arg2: i32) -> (i32, i32) {
    %c0_i32 = arith.constant 0 : i32
    return %arg0, %arg2 : i32, i32
  }
  func.func @transform_1(%arg0: i32, %arg1: i32, %arg2: i32) -> (i32, i32) {
    %c0_i32 = arith.constant 0 : i32
    return %arg2, %arg1 : i32, i32
  }
  func.func @transform_2(%arg0: i32, %arg1: i32, %arg2: i32) -> (i32, i32) {
    %c0_i32 = arith.constant 0 : i32
    %c0_i32_0 = arith.constant 0 : i32
    return %c0_i32, %arg1 : i32, i32
  }
  func.func @transform_3(%arg0: i32, %arg1: i32, %arg2: i32) -> (i32, i32) {
    %c0_i32 = arith.constant 0 : i32
    return %arg0, %arg1 : i32, i32
  }
}

</mosaic_0001>

<bundles_post_ra>
// kernel: attention_forward.6
= control target key start
LH: loop header
LB: loop body
LE: loop exit
PB: predicated region body
PF: predicated region fallthrough
CT: control target
= control target key end

     0   :  { %s606_s18 = smov 0   ;;  %s608_s19 = smov 0   ;;  %s716_s0 = inlined_call_operand.vmem [shape: f32[32,128], index: 0, kind: input, shape index: {}]   ;;  %s717_s1 = inlined_call_operand.vmem [shape: f32[128,32], index: 1, kind: input, shape index: {}]   ;;  %s718_s2 = inlined_call_operand.vmem [shape: f32[1,32], index: 2, kind: input, shape index: {}]   ;;  %s719_s3 = inlined_call_operand.vmem [shape: f32[1,32], index: 3, kind: input, shape index: {}]   ;;  %s720_s4 = inlined_call_operand.vmem [shape: f32[1,32], index: 4, kind: input, shape index: {}]   ;;  %s721_s5 = inlined_call_operand.vmem [shape: f32[32,32], index: 5, kind: output, shape index: {}]  }
   0x1   :  { %s610_s20 = smov 0  }
   0x2 LB: > { %s27_s21 = sadd.s32 1, %s568_s19  ;;  %p492_p0 = scmp.ge.s32.totalorder %s572_s20, 1  ;;  %s572_s20 = sphi %s610_s20, %s15_s20   ;;  %s568_s19 = sphi %s608_s19, %s723_s19   ;;  %s564_s18 = sphi %s606_s18, %s722_s18  }
   0x3   : > { %p29_p1 = scmp.ge.s32.totalorder %s27_s21, 2  ;;  %p216_p2 = scmp.lt.s32.totalorder %s572_s20, 3 }
   0x5   : > { %s725_s21 = smov (%p29_p1, %s27_s21), 0  ;;  %p217_p3 = pnand %p492_p0, %p216_p2 }
   0x6   : > { %s493_s13 = sshll.u32 (!%p217_p3), %s564_s18, 1 }
   0x7   : > { %220 = sbr.rel (%p217_p3) target bundleno = 459 (0x1cb), region = 40  ;;  %p253_p4 = scmp.lt.s32.totalorder (!%p217_p3), %s493_s13, 3 }
   0xc   : > { %v299_v0 = vld [vmem:[%s717_s1 + $0x78] sm:$0xff]  ;;  %v298_v1 = vld [vmem:[%s717_s1 + $0x70] sm:$0xff]  ;;  %vm277_vm0 = vcmask 261120   ;;  %v574_v2 = vmov 0.0   ;;  %v297_v3 = vld [vmem:[%s717_s1 + $0x68] sm:$0xff]  ;;  %s727_s13 = smov (!%p253_p4, %s493_s13), 3 }
   0xd   : > { %300 = vmatpush.msra.mxu0 %v299_v0  ;;  %499 = vmatpush.msra.mxu1 %v299_v0  ;;  %278 = vst.msk [vmem:[#allocation2] sm:$0xff] %vm277_vm0, %v574_v2  ;;  %v296_v4 = vld [vmem:[%s717_s1 + $0x60] sm:$0xff]  ;;  %v295_v5 = vld [vmem:[%s717_s1 + $0x58] sm:$0xff]  ;;  %v294_v6 = vld [vmem:[%s717_s1 + $0x50] sm:$0xff]  ;;  %s494_s27 = sshll.u32 %s727_s13, 3  ;;  %v575_v32 = vmov 32.0  }
   0xe   : > { %279 = vst.msk [vmem:[#allocation2 + $0x8] sm:$0xff] %vm277_vm0, %v574_v2  ;;  %v293_v7 = vld [vmem:[%s717_s1 + $0x48] sm:$0xff]  ;;  %v292_v8 = vld [vmem:[%s717_s1 + $0x40] sm:$0xff]  ;;  %v291_v9 = vld [vmem:[%s717_s1 + $0x38] sm:$0xff]  ;;  %s259_s9 = scalar_lea.vmem %s716_s0, %s494_s27  ;;  %544 = vrcp.f32 %v575_v32  ;;  %s271_s24 = scalar_lea.vmem %s721_s5, %s494_s27 }
   0xf   : > { %301 = vmatpush.msra.mxu0 %v298_v1  ;;  %500 = vmatpush.msra.mxu1 %v298_v1  ;;  %v290_v10 = vld [vmem:[%s717_s1 + $0x30] sm:$0xff]  ;;  %v289_v11 = vld [vmem:[%s717_s1 + $0x28] sm:$0xff]  ;;  %v288_v12 = vld [vmem:[%s717_s1 + $0x20] sm:$0xff] }
  0x10   : > { %v287_v13 = vld [vmem:[%s717_s1 + $0x18] sm:$0xff]  ;;  %v286_v14 = vld [vmem:[%s717_s1 + $0x10] sm:$0xff]  ;;  %v285_v15 = vld [vmem:[%s717_s1 + $0x8] sm:$0xff] }
  0x11   : > { %302 = vmatpush.msra.mxu0 %v297_v3  ;;  %501 = vmatpush.msra.mxu1 %v297_v3  ;;  %v284_v16 = vld [vmem:[%s717_s1] sm:$0xff]  ;;  %v283_v18 = vld [vmem:[%s259_s9 + $0x8] sm:$0xff] }
  0x12   : > { %v282_v17 = vld [vmem:[%s259_s9] sm:$0xff] }
  0x13   : > { %303 = vmatpush.msra.mxu0 %v296_v4  ;;  %502 = vmatpush.msra.mxu1 %v296_v4  ;;  %v541_v25 = vld [vmem:[%s718_s2] ss:$0 sm:$0xff] }
  0x14   : > { %v280_v19 = vld [vmem:[#allocation2] sm:$0xff]  ;;  %v545_v33 = vpop.eup %544 }
  0x15   : > { %304 = vmatpush.msra.mxu0 %v295_v5  ;;  %503 = vmatpush.msra.mxu1 %v295_v5  ;;  %v281_v20 = vld [vmem:[#allocation2 + $0x8] sm:$0xff]  ;;  %v346_v34 = vmul.f32 32.0, %v545_v33  ;;  %vm350_vm1 = vweird.f32 %v545_v33  ;;  %v542_v63 = vld [vmem:[%s719_s3] ss:$0 sm:$0xff] }
  0x16   : > { %v543_v2 = vld [vmem:[%s720_s4] ss:$0 sm:$0xff] }
  0x17   : > { %305 = vmatpush.msra.mxu0 %v294_v6  ;;  %504 = vmatpush.msra.mxu1 %v294_v6  ;;  %v347_v35 = vsub.f32 1.0, %v346_v34 }
  0x19   : > { %306 = vmatpush.msra.mxu0 %v293_v7  ;;  %505 = vmatpush.msra.mxu1 %v293_v7  ;;  %v348_v36 = vmul.f32 %v545_v33, %v347_v35 }
  0x1b   : > { %307 = vmatpush.msra.mxu0 %v292_v8  ;;  %506 = vmatpush.msra.mxu1 %v292_v8  ;;  %v349_v37 = vadd.f32 %v545_v33, %v348_v36 }
  0x1d   : > { %308 = vmatpush.msra.mxu0 %v291_v9  ;;  %507 = vmatpush.msra.mxu1 %v291_v9  ;;  %v351_v38 = vsel %vm350_vm1, %v545_v33, %v349_v37 }
  0x1f   : > { %309 = vmatpush.msra.mxu0 %v290_v10  ;;  %508 = vmatpush.msra.mxu1 %v290_v10 }
  0x21   : > { %310 = vmatpush.msra.mxu0 %v289_v11  ;;  %509 = vmatpush.msra.mxu1 %v289_v11 }
  0x23   : > { %311 = vmatpush.msra.mxu0 %v288_v12  ;;  %510 = vmatpush.msra.mxu1 %v288_v12 }
  0x25   : > { %312 = vmatpush.msra.mxu0 %v287_v13  ;;  %511 = vmatpush.msra.mxu1 %v287_v13 }
  0x27   : > { %313 = vmatpush.msra.mxu0 %v286_v14  ;;  %512 = vmatpush.msra.mxu1 %v286_v14 }
  0x29   : > { %314 = vmatpush.msra.mxu0 %v285_v15  ;;  %513 = vmatpush.msra.mxu1 %v285_v15 }
  0x2b   : > { %315 = vmatpush.msra.mxu0 %v284_v16  ;;  %514 = vmatpush.msra.mxu1 %v284_v16 }
  0x2c   : > { %316 = vmatmul.f32.vlgmr.msra.gmra.mxu0 %v282_v17  ;;  %319 = vmatmul.f32.vlgmr.msra.gmra.mxu1 %v283_v18 }
  0xa9   : > { %v317_v21 = vpop.f32.mrf.mxu0  ;;  %v320_v22 = vpop.f32.mrf.mxu1 }
  0xaa   : > { %v323_v23 = vadd.f32 %v317_v21, %v280_v19  ;;  %v324_v24 = vadd.f32 %v320_v22, %v281_v20 }
  0xac   : > { %326 = vst.msk [vmem:[#allocation2] sm:$0xff] %vm277_vm0, %v323_v23 }
  0xad   : > { %327 = vst.msk [vmem:[#allocation2 + $0x8] sm:$0xff] %vm277_vm0, %v324_v24 }
  0xb3   : > { %v331_v26 = vld [vmem:[#allocation2] sm:$0xff] }
  0xb4   : > { %v337_v27 = vadd.f32 %v541_v25, %v331_v26  ;;  %v332_v28 = vld [vmem:[#allocation2 + $0x8] sm:$0xff] }
  0xb5   : > { %v338_v30 = vadd.f32 %v541_v25, %v332_v28 }
  0xb6   : > { %v339_v29 = vsel %vm277_vm0, %v337_v27, 0.0 }
  0xb7   : > { %340 = vadd.xlane.f32.xlu0 %v339_v29  ;;  %v342_v31 = vsel %vm277_vm0, %v338_v30, 0.0 }
  0xbf   : > { %343 = vadd.xlane.f32.xlu0 %v342_v31 }
 0x12a   : > { %v341_v39 = vpop.xlane.xlu0 %340 }
 0x12b   : > { %v352_v40 = vmul.f32 %v351_v38, %v341_v39 }
 0x12d   : > { %v354_v41 = vsub.f32 %v337_v27, %v352_v40 }
 0x12f   : > { %v356_v42 = vmul.f32 %v354_v41, %v354_v41 }
 0x131   : > { %v358_v43 = vsel %vm277_vm0, %v356_v42, 0.0 }
 0x132   : > { %359 = vadd.xlane.f32.xlu1 %v358_v43  ;;  %v344_v44 = vpop.xlane.xlu0 %343 }
 0x133   : > { %v353_v45 = vmul.f32 %v351_v38, %v344_v44 }
 0x135   : > { %v355_v46 = vsub.f32 %v338_v30, %v353_v45 }
 0x137   : > { %v357_v47 = vmul.f32 %v355_v46, %v355_v46 }
 0x139   : > { %v361_v48 = vsel %vm277_vm0, %v357_v47, 0.0 }
 0x13a   : > { %362 = vadd.xlane.f32.xlu1 %v361_v48 }
 0x1a5   : > { %v360_v49 = vpop.xlane.xlu1 %359 }
 0x1a6   : > { %v364_v50 = vmul.f32 %v360_v49, %v351_v38 }
 0x1a8   : > { %v366_v51 = vadd.f32 1e-05, %v364_v50 }
 0x1aa   : > { %546 = vrsqrt.f32 %v366_v51  ;;  %vm374_vm3 = vweird.f32 %v366_v51 }
 0x1ad   : > { %v363_v52 = vpop.xlane.xlu1 %362 }
 0x1ae   : > { %v365_v53 = vmul.f32 %v363_v52, %v351_v38 }
 0x1b0   : > { %v547_v54 = vpop.eup %546  ;;  %v367_v55 = vadd.f32 1e-05, %v365_v53 }
 0x1b1   : > { %v369_v56 = vmul.f32 %v547_v54, %v366_v51  ;;  %vm375_vm2 = vweird.f32 %v547_v54 }
 0x1b2   : > { %548 = vrsqrt.f32 %v367_v55  ;;  %vm376_vm4 = vmor %vm374_vm3, %vm375_vm2  ;;  %vm384_vm6 = vweird.f32 %v367_v55 }
 0x1b3   : > { %v370_v57 = vmul.f32 %v547_v54, %v369_v56 }
 0x1b5   : > { %v371_v58 = vmul.f32 0.5, %v370_v57 }
 0x1b7   : > { %v372_v59 = vsub.f32 1.5, %v371_v58 }
 0x1b8   : > { %v549_v60 = vpop.eup %548 }
 0x1b9   : > { %v373_v61 = vmul.f32 %v547_v54, %v372_v59  ;;  %v379_v62 = vmul.f32 %v549_v60, %v367_v55  ;;  %vm385_vm5 = vweird.f32 %v549_v60 }
 0x1ba   : > { %vm386_vm7 = vmor %vm384_vm6, %vm385_vm5 }
 0x1bb   : > { %v377_v0 = vsel %vm376_vm4, %v547_v54, %v373_v61  ;;  %v380_v1 = vmul.f32 %v549_v60, %v379_v62 }
 0x1bc   : > { %v388_v3 = vmul.f32 %v377_v0, %v354_v41 }
 0x1bd   : > { %v381_v4 = vmul.f32 0.5, %v380_v1 }
 0x1be   : > { %v394_v5 = vmul.f32 %v542_v63, %v388_v3 }
 0x1bf   : > { %v382_v6 = vsub.f32 1.5, %v381_v4 }
 0x1c0   : > { %v400_v7 = vadd.f32 %v543_v2, %v394_v5 }
 0x1c1   : > { %v383_v8 = vmul.f32 %v549_v60, %v382_v6 }
 0x1c2   : > { %402 = vst.msk [vmem:[%s271_s24] sm:$0xff] %vm277_vm0, %v400_v7 }
 0x1c3   : > { %v387_v9 = vsel %vm386_vm7, %v549_v60, %v383_v8 }
 0x1c4   : > { %v389_v10 = vmul.f32 %v387_v9, %v355_v46 }
 0x1c6   : > { %v395_v11 = vmul.f32 %v542_v63, %v389_v10 }
 0x1c8   : > { %v401_v12 = vadd.f32 %v543_v2, %v395_v11 }
 0x1ca   : > { %403 = vst.msk [vmem:[%s271_s24 + $0x8] sm:$0xff] %vm277_vm0, %v401_v12 }
 0x1cb PF: > { %s15_s20 = sadd.s32 1, %s572_s20   ;;  %s722_s18 = smov %s568_s19 }
 0x1cc   : > { %p12_p5 = scmp.ge.s32.totalorder %s15_s20, 4   ;;  %s723_s19 = smov %s725_s21 }
 0x1ce   :  { %14 = sbr.rel (!%p12_p5) target bundleno = 2 (0x2), region = 81 }

// kernel: attention_forward.7
= control target key start
LH: loop header
LB: loop body
LE: loop exit
PB: predicated region body
PF: predicated region fallthrough
CT: control target
= control target key end

     0   :  { %s523_s12 = smov 0   ;;  %s525_s13 = smov 0   ;;  %s577_s0 = inlined_call_operand.vmem [shape: f32[32,32], index: 0, kind: input, shape index: {}]   ;;  %s578_s1 = inlined_call_operand.vmem [shape: f32[32,64], index: 1, kind: input, shape index: {}]   ;;  %s579_s2 = inlined_call_operand.vmem [shape: f32[1,64], index: 2, kind: input, shape index: {}]   ;;  %s580_s3 = inlined_call_operand.vmem [shape: f32[32,64], index: 3, kind: output, shape index: {}]  }
   0x1   :  { %s527_s14 = smov 0  }
   0x2 LB: > { %s32_s15 = sadd.s32 1, %s496_s13  ;;  %p439_p0 = scmp.ge.s32.totalorder %s500_s14, 1  ;;  %s500_s14 = sphi %s527_s14, %s13_s14   ;;  %s496_s13 = sphi %s525_s13, %s582_s13   ;;  %s492_s12 = sphi %s523_s12, %s581_s12  }
   0x3   : > { %p34_p1 = scmp.ge.s32.totalorder %s32_s15, 2  ;;  %p188_p2 = scmp.lt.s32.totalorder %s500_s14, 3 }
   0x5   : > { %s584_s15 = smov (%p34_p1, %s32_s15), 0  ;;  %p189_p3 = pnand %p439_p0, %p188_p2 }
   0x6   : > { %s440_s20 = sshll.u32 (!%p189_p3), %s492_s12, 1 }
   0x7   : > { %192 = sbr.rel (%p189_p3) target bundleno = 160 (0xa0), region = 32  ;;  %p230_p4 = scmp.lt.s32.totalorder (!%p189_p3), %s440_s20, 3 }
   0xc   : > { %v273_v0 = vld [vmem:[%s578_s1 + $0x18] sm:$0xff]  ;;  %v272_v1 = vld [vmem:[%s578_s1 + $0x10] sm:$0xff]  ;;  %vm263_vm0 = vcmask 523264   ;;  %v271_v2 = vld [vmem:[%s578_s1 + $0x8] sm:$0xff]  ;;  %v502_v3 = vmov 0.0   ;;  %s586_s20 = smov (!%p230_p4, %s440_s20), 3 }
   0xd   : > { %293 = vmatpush.msra.mxu0 %v273_v0  ;;  %448 = vmatpush.msra.mxu1 %v273_v0  ;;  %264 = vst.msk [vmem:[#allocation2] sm:$0xff] %vm263_vm0, %v502_v3  ;;  %v270_v4 = vld [vmem:[%s578_s1] sm:$0xff]  ;;  %s441_s25 = sshll.u32 %s586_s20, 3  ;;  %vm274_vm1 = vcmask 261120  }
   0xe   : > { %265 = vst.msk [vmem:[#allocation2 + $0x8] sm:$0xff] %vm263_vm0, %v502_v3  ;;  %s236_s28 = scalar_lea.vmem %s577_s0, %s441_s25  ;;  %v477_v13 = vld [vmem:[%s579_s2] ss:$0 sm:$0xff]  ;;  %s257_s6 = scalar_lea.vmem %s580_s3, %s441_s25 }
   0xf   : > { %294 = vmatpush.msra.mxu0 %v272_v1  ;;  %449 = vmatpush.msra.mxu1 %v272_v1  ;;  %v268_v5 = vld [vmem:[%s236_s28] sm:$0xff]  ;;  %v269_v6 = vld [vmem:[%s236_s28 + $0x8] sm:$0xff] }
  0x11   : > { %295 = vmatpush.msra.mxu0 %v271_v2  ;;  %450 = vmatpush.msra.mxu1 %v271_v2 }
  0x13   : > { %296 = vmatpush.msra.mxu0 %v270_v4  ;;  %451 = vmatpush.msra.mxu1 %v270_v4 }
  0x14   : > { %444 = vmatmul.msk.f32.vlgmr.msra.gmra.mxu0 %vm274_vm1, %v268_v5  ;;  %445 = vmatmul.msk.f32.vlgmr.msra.gmra.mxu1 %vm274_vm1, %v269_v6  ;;  %v266_v7 = vld [vmem:[#allocation2] sm:$0xff] }
  0x15   : > { %v267_v8 = vld [vmem:[#allocation2 + $0x8] sm:$0xff] }
  0x91   : > { %v298_v9 = vpop.f32.mrf.mxu0  ;;  %v301_v10 = vpop.f32.mrf.mxu1 }
  0x92   : > { %v304_v11 = vadd.f32 %v298_v9, %v266_v7  ;;  %v305_v12 = vadd.f32 %v301_v10, %v267_v8 }
  0x94   : > { %307 = vst.msk [vmem:[#allocation2] sm:$0xff] %vm263_vm0, %v304_v11 }
  0x95   : > { %308 = vst.msk [vmem:[#allocation2 + $0x8] sm:$0xff] %vm263_vm0, %v305_v12 }
  0x9b   : > { %v312_v14 = vld [vmem:[#allocation2] sm:$0xff] }
  0x9c   : > { %v318_v15 = vadd.f32 %v477_v13, %v312_v14  ;;  %v313_v16 = vld [vmem:[#allocation2 + $0x8] sm:$0xff] }
  0x9d   : > { %v319_v17 = vadd.f32 %v477_v13, %v313_v16 }
  0x9e   : > { %320 = vst.msk [vmem:[%s257_s6] sm:$0xff] %vm263_vm0, %v318_v15 }
  0x9f   : > { %321 = vst.msk [vmem:[%s257_s6 + $0x8] sm:$0xff] %vm263_vm0, %v319_v17 }
  0xa0 PF: > { %s13_s14 = sadd.s32 1, %s500_s14   ;;  %s581_s12 = smov %s496_s13 }
  0xa1   : > { %p10_p5 = scmp.ge.s32.totalorder %s13_s14, 4   ;;  %s582_s13 = smov %s584_s15 }
  0xa3   :  { %12 = sbr.rel (!%p10_p5) target bundleno = 2 (0x2), region = 76 }

// kernel: attention_forward.5
= control target key start
LH: loop header
LB: loop body
LE: loop exit
PB: predicated region body
PF: predicated region fallthrough
CT: control target
= control target key end

     0   :  { %s620_s12 = smov 0   ;;  %s622_s13 = smov 0   ;;  %s717_s0 = inlined_call_operand.vmem [shape: f32[128,32], index: 0, kind: input, shape index: {}]   ;;  %s718_s1 = inlined_call_operand.vmem [shape: f32[32,32], index: 1, kind: input, shape index: {}]   ;;  %s719_s2 = inlined_call_operand.vmem [shape: f32[1,32], index: 2, kind: input, shape index: {}]   ;;  %s720_s3 = inlined_call_operand.vmem [shape: f32[128,32], index: 3, kind: output, shape index: {}]  }
   0x1   :  { %s624_s14 = smov 0  }
   0x2 LB: > { %s32_s15 = sadd.s32 1, %s593_s13  ;;  %p522_p0 = scmp.ge.s32.totalorder %s597_s14, 1  ;;  %s597_s14 = sphi %s624_s14, %s13_s14   ;;  %s593_s13 = sphi %s622_s13, %s722_s13   ;;  %s589_s12 = sphi %s620_s12, %s721_s12  }
   0x3   : > { %p34_p1 = scmp.ge.s32.totalorder %s32_s15, 2  ;;  %p188_p2 = scmp.lt.s32.totalorder %s597_s14, 3 }
   0x5   : > { %s724_s15 = smov (%p34_p1, %s32_s15), 0  ;;  %p189_p3 = pnand %p522_p0, %p188_p2 }
   0x6   : > { %s523_s20 = sshll.u32 (!%p189_p3), %s589_s12, 3 }
   0x7   : > { %192 = sbr.rel (%p189_p3) target bundleno = 174 (0xae), region = 32  ;;  %p230_p4 = scmp.lt.s32.totalorder (!%p189_p3), %s523_s20, 15 }
   0xc   : > { %v291_v0 = vld [vmem:[%s718_s1 + $0x18] sm:$0xff]  ;;  %v290_v1 = vld [vmem:[%s718_s1 + $0x10] sm:$0xff]  ;;  %vm263_vm0 = vcmask 261120   ;;  %v599_v2 = vmov 0.0   ;;  %v289_v3 = vld [vmem:[%s718_s1 + $0x8] sm:$0xff]  ;;  %s726_s20 = smov (!%p230_p4, %s523_s20), 15 }
   0xd   : > { %538 = vmatpush.msra.mxu2 %v291_v0  ;;  %539 = vmatpush.msra.mxu3 %v291_v0  ;;  %264 = vst.msk [vmem:[#allocation2] sm:$0xff] %vm263_vm0, %v599_v2  ;;  %v288_v4 = vld [vmem:[%s718_s1] sm:$0xff]  ;;  %s524_s25 = sshll.u32 %s726_s20, 3 }
   0xe   : > { %329 = vmatpush.msra.mxu0 %v291_v0  ;;  %537 = vmatpush.msra.mxu1 %v291_v0  ;;  %265 = vst.msk [vmem:[#allocation2 + $0x8] sm:$0xff] %vm263_vm0, %v599_v2  ;;  %s236_s28 = scalar_lea.vmem %s717_s0, %s524_s25  ;;  %v574_v27 = vld [vmem:[%s719_s2] ss:$0 sm:$0xff]  ;;  %s686_s6 = scalar_lea.vmem %s720_s3, %s524_s25 }
   0xf   : > { %541 = vmatpush.msra.mxu2 %v290_v1  ;;  %542 = vmatpush.msra.mxu3 %v290_v1  ;;  %266 = vst.msk [vmem:[#allocation2 + $0x10] sm:$0xff] %vm263_vm0, %v599_v2  ;;  %v284_v5 = vld [vmem:[%s236_s28 + $0x20] sm:$0xff]  ;;  %v286_v6 = vld [vmem:[%s236_s28 + $0x30] sm:$0xff]  ;;  %v285_v9 = vld [vmem:[%s236_s28 + $0x28] sm:$0xff] }
  0x10   : > { %330 = vmatpush.msra.mxu0 %v290_v1  ;;  %540 = vmatpush.msra.mxu1 %v290_v1  ;;  %267 = vst.msk [vmem:[#allocation2 + $0x18] sm:$0xff] %vm263_vm0, %v599_v2  ;;  %v280_v7 = vld [vmem:[%s236_s28] sm:$0xff]  ;;  %v282_v8 = vld [vmem:[%s236_s28 + $0x10] sm:$0xff]  ;;  %v287_v10 = vld [vmem:[%s236_s28 + $0x38] sm:$0xff] }
  0x11   : > { %544 = vmatpush.msra.mxu2 %v289_v3  ;;  %545 = vmatpush.msra.mxu3 %v289_v3  ;;  %268 = vst.msk [vmem:[#allocation2 + $0x20] sm:$0xff] %vm263_vm0, %v599_v2  ;;  %v281_v11 = vld [vmem:[%s236_s28 + $0x8] sm:$0xff]  ;;  %v283_v12 = vld [vmem:[%s236_s28 + $0x18] sm:$0xff] }
  0x12   : > { %331 = vmatpush.msra.mxu0 %v289_v3  ;;  %543 = vmatpush.msra.mxu1 %v289_v3  ;;  %269 = vst.msk [vmem:[#allocation2 + $0x28] sm:$0xff] %vm263_vm0, %v599_v2 }
  0x13   : > { %547 = vmatpush.msra.mxu2 %v288_v4  ;;  %548 = vmatpush.msra.mxu3 %v288_v4  ;;  %270 = vst.msk [vmem:[#allocation2 + $0x30] sm:$0xff] %vm263_vm0, %v599_v2 }
  0x14   : > { %531 = vmatmul.msk.f32.vlgmr.msra.gmra.mxu2 %vm263_vm0, %v284_v5  ;;  %533 = vmatmul.msk.f32.vlgmr.msra.gmra.mxu3 %vm263_vm0, %v286_v6  ;;  %271 = vst.msk [vmem:[#allocation2 + $0x38] sm:$0xff] %vm263_vm0, %v599_v2  ;;  %v272_v13 = vld [vmem:[#allocation2] sm:$0xff] }
  0x15   : > { %332 = vmatpush.msra.mxu0 %v288_v4  ;;  %546 = vmatpush.msra.mxu1 %v288_v4  ;;  %v273_v25 = vld [vmem:[#allocation2 + $0x8] sm:$0xff] }
  0x16   : > { %527 = vmatmul.msk.f32.vlgmr.msra.gmra.mxu0 %vm263_vm0, %v280_v7  ;;  %529 = vmatmul.msk.f32.vlgmr.msra.gmra.mxu1 %vm263_vm0, %v282_v8  ;;  %v274_v14 = vld [vmem:[#allocation2 + $0x10] sm:$0xff] }
  0x17   : > { %v275_v26 = vld [vmem:[#allocation2 + $0x18] sm:$0xff] }
  0x18   : > { %v276_v19 = vld [vmem:[#allocation2 + $0x20] sm:$0xff] }
  0x19   : > { %v277_v33 = vld [vmem:[#allocation2 + $0x28] sm:$0xff] }
  0x1a   : > { %v278_v20 = vld [vmem:[#allocation2 + $0x30] sm:$0xff] }
  0x1b   : > { %v279_v34 = vld [vmem:[#allocation2 + $0x38] sm:$0xff] }
  0x1c   : > { %532 = vmatmul.msk.f32.gmra.mxu2 %vm263_vm0, %v285_v9  ;;  %534 = vmatmul.msk.f32.gmra.mxu3 %vm263_vm0, %v287_v10 }
  0x1e   : > { %528 = vmatmul.msk.f32.gmra.mxu0 %vm263_vm0, %v281_v11  ;;  %530 = vmatmul.msk.f32.gmra.mxu1 %vm263_vm0, %v283_v12 }
  0x93   : > { %v334_v15 = vpop.f32.mrf.mxu0  ;;  %v340_v16 = vpop.f32.mrf.mxu1 }
  0x94   : > { %v358_v17 = vadd.f32 %v334_v15, %v272_v13  ;;  %v360_v18 = vadd.f32 %v340_v16, %v274_v14 }
  0x96   : > { %366 = vst.msk [vmem:[#allocation2] sm:$0xff] %vm263_vm0, %v358_v17 }
  0x97   : > { %368 = vst.msk [vmem:[#allocation2 + $0x10] sm:$0xff] %vm263_vm0, %v360_v18  ;;  %v346_v21 = vpop.f32.mrf.mxu2  ;;  %v352_v22 = vpop.f32.mrf.mxu3 }
  0x98   : > { %v362_v23 = vadd.f32 %v346_v21, %v276_v19  ;;  %v364_v24 = vadd.f32 %v352_v22, %v278_v20 }
  0x9a   : > { %370 = vst.msk [vmem:[#allocation2 + $0x20] sm:$0xff] %vm263_vm0, %v362_v23 }
  0x9b   : > { %372 = vst.msk [vmem:[#allocation2 + $0x30] sm:$0xff] %vm263_vm0, %v364_v24  ;;  %v337_v28 = vpop.f32.mrf.mxu0  ;;  %v343_v29 = vpop.f32.mrf.mxu1 }
  0x9c   : > { %v359_v30 = vadd.f32 %v337_v28, %v273_v25  ;;  %v361_v31 = vadd.f32 %v343_v29, %v275_v26 }
  0x9d   : > { %v377_v32 = vld [vmem:[#allocation2] sm:$0xff] }
  0x9e   : > { %v389_v35 = vadd.f32 %v574_v27, %v377_v32  ;;  %v379_v36 = vld [vmem:[#allocation2 + $0x10] sm:$0xff]  ;;  %367 = vst.msk [vmem:[#allocation2 + $0x8] sm:$0xff] %vm263_vm0, %v359_v30 }
  0x9f   : > { %v391_v37 = vadd.f32 %v574_v27, %v379_v36  ;;  %369 = vst.msk [vmem:[#allocation2 + $0x18] sm:$0xff] %vm263_vm0, %v361_v31  ;;  %v349_v38 = vpop.f32.mrf.mxu2  ;;  %v355_v39 = vpop.f32.mrf.mxu3 }
  0xa0   : > { %397 = vst.msk [vmem:[%s686_s6] sm:$0xff] %vm263_vm0, %v389_v35  ;;  %v363_v40 = vadd.f32 %v349_v38, %v277_v33  ;;  %v365_v41 = vadd.f32 %v355_v39, %v279_v34 }
  0xa1   : > { %399 = vst.msk [vmem:[%s686_s6 + $0x10] sm:$0xff] %vm263_vm0, %v391_v37  ;;  %v381_v42 = vld [vmem:[#allocation2 + $0x20] sm:$0xff] }
  0xa2   : > { %v393_v43 = vadd.f32 %v574_v27, %v381_v42  ;;  %v383_v44 = vld [vmem:[#allocation2 + $0x30] sm:$0xff]  ;;  %371 = vst.msk [vmem:[#allocation2 + $0x28] sm:$0xff] %vm263_vm0, %v363_v40 }
  0xa3   : > { %v395_v45 = vadd.f32 %v574_v27, %v383_v44  ;;  %373 = vst.msk [vmem:[#allocation2 + $0x38] sm:$0xff] %vm263_vm0, %v365_v41 }
  0xa4   : > { %401 = vst.msk [vmem:[%s686_s6 + $0x20] sm:$0xff] %vm263_vm0, %v393_v43 }
  0xa5   : > { %403 = vst.msk [vmem:[%s686_s6 + $0x30] sm:$0xff] %vm263_vm0, %v395_v45  ;;  %v378_v46 = vld [vmem:[#allocation2 + $0x8] sm:$0xff] }
  0xa6   : > { %v390_v47 = vadd.f32 %v574_v27, %v378_v46  ;;  %v380_v48 = vld [vmem:[#allocation2 + $0x18] sm:$0xff] }
  0xa7   : > { %v392_v49 = vadd.f32 %v574_v27, %v380_v48 }
  0xa8   : > { %398 = vst.msk [vmem:[%s686_s6 + $0x8] sm:$0xff] %vm263_vm0, %v390_v47 }
  0xa9   : > { %400 = vst.msk [vmem:[%s686_s6 + $0x18] sm:$0xff] %vm263_vm0, %v392_v49  ;;  %v382_v50 = vld [vmem:[#allocation2 + $0x28] sm:$0xff] }
  0xaa   : > { %v394_v51 = vadd.f32 %v574_v27, %v382_v50  ;;  %v384_v52 = vld [vmem:[#allocation2 + $0x38] sm:$0xff] }
  0xab   : > { %v396_v53 = vadd.f32 %v574_v27, %v384_v52 }
  0xac   : > { %402 = vst.msk [vmem:[%s686_s6 + $0x28] sm:$0xff] %vm263_vm0, %v394_v51 }
  0xad   : > { %404 = vst.msk [vmem:[%s686_s6 + $0x38] sm:$0xff] %vm263_vm0, %v396_v53 }
  0xae PF: > { %s13_s14 = sadd.s32 1, %s597_s14   ;;  %s721_s12 = smov %s593_s13 }
  0xaf   : > { %p10_p5 = scmp.ge.s32.totalorder %s13_s14, 4   ;;  %s722_s13 = smov %s724_s15 }
  0xb1   :  { %12 = sbr.rel (!%p10_p5) target bundleno = 2 (0x2), region = 76 }

// kernel: attention_forward.8
= control target key start
LH: loop header
LB: loop body
LE: loop exit
PB: predicated region body
PF: predicated region fallthrough
CT: control target
= control target key end

     0   :  { %s1644_s9 = smov 0   ;;  %s2247_s0 = inlined_call_operand.vmem [shape: f32[2,64,32], index: 0, kind: input, shape index: {}]   ;;  %s2248_s1 = inlined_call_operand.vmem [shape: f32[2,16,64], index: 1, kind: input, shape index: {}]   ;;  %s2249_s2 = inlined_call_operand.vmem [shape: f32[2,64,32], index: 2, kind: output, shape index: {}]  }
   0x1 LB: > { %s1355_s10 = sadd.s32 4294967295, %s1617_s9   ;;  %p1359_p0 = scmp.ge.s32.totalorder %s1617_s9, 1  ;;  %s1617_s9 = sphi %s1644_s9, %s12_s9  }
   0x2   : > { %p122_p1 = scmp.lt.s32.totalorder %s1617_s9, 3 }
   0x4   : > { %p123_p2 = pnand %p1359_p0, %p122_p1 }
   0x5   : > { %p149_p3 = scmp.lt.s32.totalorder (!%p123_p2), %s1355_s10, 1  ;;  %s1619_s19 = smov (!%p123_p2), 120  }
   0x6   : > { %126 = sbr.rel (%p123_p2) target bundleno = 1374 (0x55e), region = 28  ;;  %s1620_s20 = smov (!%p123_p2), 96  }
   0x7   : > { %s1621_s21 = smov (!%p123_p2), 112   ;;  %s1622_s22 = smov (!%p123_p2), 104  }
   0x8   : > { %s1623_s23 = smov (!%p123_p2), 88   ;;  %s1624_s24 = smov (!%p123_p2), 80  }
   0x9   : > { %s1625_s25 = smov (!%p123_p2), 72   ;;  %s1626_s26 = smov (!%p123_p2), 8  }
   0xa   : > { %s1627_s27 = smov (!%p123_p2), 24   ;;  %s1628_s28 = smov (!%p123_p2), 16  }
   0xb   : > { %s2251_s10 = smov (!%p149_p3, %s1355_s10), 1  ;;  %vm174_vm0 = vcmask 64512   ;;  %vm254_vm1 = vcmask 130048   ;;  %vm1270_vm2 = vcmask 195584   ;;  %vm1279_vm3 = vcmask 261120  }
   0xc   : > { %s1441_s11 = sshll.u32 %s2251_s10, 4  ;;  %s1440_s12 = sshll.u32 %s2251_s10, 6 }
   0xd   : > { %s1659_s15 = scalar_lea.vmem %s2248_s1, %s1441_s11  ;;  %s1666_s18 = scalar_lea.vmem %s2247_s0, %s1440_s12 }
   0xe   : > { %v1669_v0 = vld [vmem:[%s1659_s15 + $0x8] sm:$0xff]  ;;  %v1674_v1 = vld [vmem:[%s1659_s15] sm:$0xff]  ;;  %v1690_v3 = vld [vmem:[%s1666_s18 + $0x18] sm:$0xff]  ;;  %s2196_s3 = scalar_lea.vmem %s2249_s2, %s1440_s12 }
   0xf   : > { %1366 = vmatpush.xpose.msk.msra.mxu0 %vm174_vm0, %v1669_v0  ;;  %v1677_v2 = vld [vmem:[%s1666_s18] sm:$0xff]  ;;  %432 = vrot.lane.b32.xlu1 %v1669_v0, %s1619_s19  ;;  %v1700_v5 = vld [vmem:[%s1666_s18 + $0x8] sm:$0xff]  ;;  %v1705_v6 = vld [vmem:[%s1666_s18 + $0x10] sm:$0xff]  ;;  %v1713_v7 = vpack.i.bf16 %v1674_v1, %v1669_v0 }
  0x10   : > { %430 = vrot.lane.b32.xlu0 %v1674_v1, %s1619_s19  ;;  %414 = vrot.lane.b32.xlu2 %v1677_v2, %s1619_s19  ;;  %v1693_v4 = vld [vmem:[%s1666_s18 + $0x20] sm:$0xff]  ;;  %v1721_v8 = vld [vmem:[%s1666_s18 + $0x28] sm:$0xff] }
  0x11   : > { %v1728_v9 = vld [vmem:[%s1666_s18 + $0x30] sm:$0xff]  ;;  %v1735_v10 = vld [vmem:[%s1666_s18 + $0x38] sm:$0xff] }
  0x13   : > { %1367 = vmatpush.xpose.msk.msra.mxu0 %vm174_vm0, %v1674_v1 }
  0x16   : > { %1368 = vmatmul.msk.f32.vlgmr.msra.gmra.mxu0 %vm174_vm0, %v1677_v2 }
  0x17   : > { %1462 = vrot.lane.b32.xlu1 %v1713_v7, %s1620_s20 }
  0x18   : > { %420 = vrot.lane.b32.xlu0 %v1690_v3, %s1619_s19  ;;  %422 = vrot.lane.b32.xlu2 %v1693_v4, %s1619_s19 }
  0x1e   : > { %1369 = vmatmul.msk.f32.gmra.mxu0 %vm174_vm0, %v1700_v5 }
  0x1f   : > { %416 = vrot.lane.b32.xlu1 %v1700_v5, %s1619_s19 }
  0x26   : > { %1370 = vmatmul.msk.f32.gmra.mxu0 %vm174_vm0, %v1705_v6 }
  0x27   : > { %418 = vrot.lane.b32.xlu1 %v1705_v6, %s1619_s19 }
  0x2e   : > { %1371 = vmatmul.msk.f32.gmra.mxu0 %vm174_vm0, %v1690_v3 }
  0x2f   : > { %424 = vrot.lane.b32.xlu1 %v1721_v8, %s1619_s19 }
  0x36   : > { %1372 = vmatmul.msk.f32.gmra.mxu0 %vm174_vm0, %v1693_v4 }
  0x3e   : > { %1373 = vmatmul.msk.f32.gmra.mxu0 %vm174_vm0, %v1721_v8 }
  0x46   : > { %1374 = vmatmul.msk.f32.gmra.mxu0 %vm174_vm0, %v1728_v9 }
  0x4e   : > { %1375 = vmatmul.msk.f32.gmra.mxu0 %vm174_vm0, %v1735_v10 }
  0x6a   : > { %v415_v22 = vpop.permute.xlu2 %414 }
  0x72   : > { %v423_v39 = vpop.permute.xlu2 %422 }
  0x81   : > { %v433_v16 = vpop.permute.xlu1 %432 }
  0x82   : > { %1384 = vmatpush.xpose.msk.msra.mxu2 %vm174_vm0, %v433_v16  ;;  %v431_v20 = vpop.permute.xlu0 %430 }
  0x86   : > { %1385 = vmatpush.xpose.msk.msra.mxu2 %vm174_vm0, %v431_v20 }
  0x89   : > { %v1463_v21 = vpop.permute.xlu1 %1462  ;;  %1386 = vmatmul.msk.f32.vlgmr.msra.gmra.mxu2 %vm174_vm0, %v415_v22 }
  0x8a   : > { %v421_v34 = vpop.permute.xlu0 %420  ;;  %v1464_v37 = vunpack.i.l.bf16 %v1463_v21  ;;  %v1465_v38 = vunpack.i.h.bf16 %v1463_v21 }
  0x8c   : > { %387 = vmatpush.msra.mxu1 %v1464_v37 }
  0x8e   : > { %388 = vmatpush.msra.mxu1 %v1465_v38 }
  0x91   : > { %v417_v26 = vpop.permute.xlu1 %416 }
  0x92   : > { %1387 = vmatmul.msk.f32.gmra.mxu2 %vm174_vm0, %v417_v26 }
  0x93   : > { %v222_v11 = vpop.f32.mrf.mxu0 }
  0x94   : > { %v246_v12 = vmul.f32 0.35355338, %v222_v11 }
  0x96   : > { %v255_v13 = vsel %vm254_vm1, %v246_v12, -inf }
  0x97   : > { %256 = vmax.xlane.f32.xlu0 %v255_v13 }
  0x99   : > { %v419_v30 = vpop.permute.xlu1 %418 }
  0x9a   : > { %1388 = vmatmul.msk.f32.gmra.mxu2 %vm174_vm0, %v419_v30 }
  0x9b   : > { %v225_v14 = vpop.f32.mrf.mxu0 }
  0x9c   : > { %v247_v15 = vmul.f32 0.35355338, %v225_v14 }
  0x9e   : > { %v258_v17 = vsel %vm254_vm1, %v247_v15, -inf }
  0x9f   : > { %259 = vmax.xlane.f32.xlu0 %v258_v17 }
  0xa1   : > { %v425_v45 = vpop.permute.xlu1 %424 }
  0xa2   : > { %1389 = vmatmul.msk.f32.gmra.mxu2 %vm174_vm0, %v421_v34 }
  0xa3   : > { %v228_v18 = vpop.f32.mrf.mxu0 }
  0xa4   : > { %v248_v19 = vmul.f32 0.35355338, %v228_v18 }
  0xa6   : > { %v261_v23 = vsel %vm254_vm1, %v248_v19, -inf }
  0xa7   : > { %262 = vmax.xlane.f32.xlu1 %v261_v23 }
  0xaa   : > { %1390 = vmatmul.msk.f32.gmra.mxu2 %vm174_vm0, %v423_v39 }
  0xab   : > { %v231_v24 = vpop.f32.mrf.mxu0 }
  0xac   : > { %v249_v25 = vmul.f32 0.35355338, %v231_v24 }
  0xae   : > { %v264_v27 = vsel %vm254_vm1, %v249_v25, -inf }
  0xaf   : > { %265 = vmax.xlane.f32.xlu1 %v264_v27 }
  0xb2   : > { %1391 = vmatmul.msk.f32.gmra.mxu2 %vm174_vm0, %v425_v45 }
  0xb3   : > { %428 = vrot.lane.b32.xlu0 %v1735_v10, %s1619_s19  ;;  %v234_v28 = vpop.f32.mrf.mxu0 }
  0xb4   : > { %v250_v29 = vmul.f32 0.35355338, %v234_v28 }
  0xb6   : > { %v267_v31 = vsel %vm254_vm1, %v250_v29, -inf }
  0xb7   : > { %268 = vmax.xlane.f32.xlu2 %v267_v31 }
  0xbb   : > { %680 = vrot.lane.b32.xlu0 %v1669_v0, %s1621_s21  ;;  %v237_v32 = vpop.f32.mrf.mxu0 }
  0xbc   : > { %v1753_v33 = vmul.f32 0.35355338, %v237_v32 }
  0xbe   : > { %v270_v35 = vsel %vm254_vm1, %v1753_v33, -inf }
  0xbf   : > { %271 = vmax.xlane.f32.xlu2 %v270_v35 }
  0xc3   : > { %v240_v36 = vpop.f32.mrf.mxu0 }
  0xc4   : > { %v1762_v43 = vmul.f32 0.35355338, %v240_v36 }
  0xc6   : > { %v273_v44 = vsel %vm254_vm1, %v1762_v43, -inf }
  0xc8   : > { %426 = vrot.lane.b32.xlu1 %v1728_v9, %s1619_s19 }
  0xcb   : > { %v243_v40 = vpop.f32.mrf.mxu0 }
  0xcc   : > { %v253_v41 = vmul.f32 0.35355338, %v243_v40 }
  0xce   : > { %v276_v42 = vsel %vm254_vm1, %v253_v41, -inf }
  0xcf   : > { %277 = vmax.xlane.f32.xlu2 %v276_v42 }
  0xe5   : > { %274 = vmax.xlane.f32.xlu0 %v273_v44 }
 0x10a   : > { %v257_v46 = vpop.xlane.xlu0 %256 }
 0x10b   : > { %v279_v47 = vsub.f32 %v246_v12, %v257_v46 }
 0x10c   : > { %v471_v36 = vpop.f32.mrf.mxu2 }
 0x10d   : > { %v287_v48 = vmul.f32 1.442695, %v279_v47 }
 0x10f   : > { %1481 = vpow2.f32 %v287_v48 }
 0x112   : > { %v260_v49 = vpop.xlane.xlu0 %259 }
 0x113   : > { %v280_v50 = vsub.f32 %v247_v15, %v260_v49 }
 0x115   : > { %v1767_v51 = vpop.eup %1481  ;;  %v289_v52 = vmul.f32 1.442695, %v280_v50  ;;  %v474_v40 = vpop.f32.mrf.mxu2 }
 0x116   : > { %v303_v53 = vsel %vm254_vm1, %v1767_v51, 0.0 }
 0x117   : > { %1483 = vpow2.f32 %v289_v52  ;;  %304 = vadd.xlane.f32.xlu2 %v303_v53  ;;  %v1857_v53 = vmul.f32 0.35355338, %v474_v40 }
 0x11a   : > { %v263_v54 = vpop.xlane.xlu1 %262 }
 0x11b   : > { %v281_v55 = vsub.f32 %v248_v19, %v263_v54  ;;  %v506_v54 = vsel %vm254_vm1, %v1857_v53, -inf }
 0x11d   : > { %v1771_v56 = vpop.eup %1483  ;;  %v291_v57 = vmul.f32 1.442695, %v281_v55  ;;  %v477_v42 = vpop.f32.mrf.mxu2 }
 0x11e   : > { %v306_v58 = vsel %vm254_vm1, %v1771_v56, 0.0 }
 0x11f   : > { %1485 = vpow2.f32 %v291_v57  ;;  %307 = vadd.xlane.f32.xlu0 %v306_v58 }
 0x122   : > { %v266_v59 = vpop.xlane.xlu1 %265 }
 0x123   : > { %v282_v60 = vsub.f32 %v249_v25, %v266_v59 }
 0x125   : > { %v1775_v61 = vpop.eup %1485  ;;  %v293_v62 = vmul.f32 1.442695, %v282_v60  ;;  %v429_v11 = vpop.permute.xlu0 %428  ;;  %v1869_v60 = vmul.f32 0.35355338, %v471_v36 }
 0x126   : > { %v309_v63 = vsel %vm254_vm1, %v1775_v61, 0.0  ;;  %v480_v46 = vpop.f32.mrf.mxu2 }
 0x127   : > { %1487 = vpow2.f32 %v293_v62  ;;  %310 = vadd.xlane.f32.xlu2 %v309_v63 }
 0x12a   : > { %v269_v12 = vpop.xlane.xlu2 %268 }
 0x12b   : > { %v283_v13 = vsub.f32 %v250_v29, %v269_v12 }
 0x12d   : > { %v1779_v14 = vpop.eup %1487  ;;  %v295_v15 = vmul.f32 1.442695, %v283_v13  ;;  %v681_v17 = vpop.permute.xlu0 %680  ;;  %v498_v13 = vmul.f32 0.35355338, %v480_v46 }
 0x12e   : > { %v312_v16 = vsel %vm254_vm1, %v1779_v14, 0.0  ;;  %1402 = vmatpush.xpose.msk.msrb.mxu1 %vm174_vm0, %v681_v17 }
 0x12f   : > { %1489 = vpow2.f32 %v295_v15  ;;  %313 = vadd.xlane.f32.xlu1 %v312_v16  ;;  %v512_v15 = vsel %vm254_vm1, %v498_v13, -inf }
 0x132   : > { %v272_v21 = vpop.xlane.xlu2 %271 }
 0x133   : > { %678 = vrot.lane.b32.xlu0 %v1674_v1, %s1621_s21  ;;  %v284_v22 = vsub.f32 %v1753_v33, %v272_v21 }
 0x135   : > { %v1786_v18 = vpop.eup %1489  ;;  %v297_v23 = vmul.f32 1.442695, %v284_v22 }
 0x136   : > { %v315_v19 = vsel %vm254_vm1, %v1786_v18, 0.0 }
 0x137   : > { %316 = vadd.xlane.f32.xlu2 %v315_v19  ;;  %1491 = vpow2.f32 %v297_v23 }
 0x13a   : > { %v427_v20 = vpop.permute.xlu1 %426 }
 0x13b   : > { %662 = vrot.lane.b32.xlu0 %v1677_v2, %s1621_s21  ;;  %1392 = vmatmul.msk.f32.gmra.mxu2 %vm174_vm0, %v427_v20 }
 0x13d   : > { %v1799_v26 = vpop.eup %1491 }
 0x13e   : > { %v318_v29 = vsel %vm254_vm1, %v1799_v26, 0.0 }
 0x142   : > { %v278_v24 = vpop.xlane.xlu2 %277 }
 0x143   : > { %1393 = vmatmul.msk.f32.gmra.mxu2 %vm174_vm0, %v429_v11  ;;  %v286_v25 = vsub.f32 %v253_v41, %v278_v24  ;;  %v503_v11 = vsel %vm254_vm1, %v1869_v60, -inf }
 0x145   : > { %v301_v28 = vmul.f32 1.442695, %v286_v25 }
 0x147   : > { %1493 = vpow2.f32 %v301_v28 }
 0x148   : > { %926 = vrot.lane.b32.xlu1 %v1674_v1, %s1622_s22 }
 0x14f   : > { %928 = vrot.lane.b32.xlu2 %v1669_v0, %s1622_s22  ;;  %v1804_v0 = vpop.eup %1493 }
 0x150   : > { %v324_v31 = vsel %vm254_vm1, %v1804_v0, 0.0 }
 0x158   : > { %v275_v27 = vpop.xlane.xlu0 %274 }
 0x159   : > { %v285_v1 = vsub.f32 %v1762_v43, %v275_v27 }
 0x15b   : > { %v299_v30 = vmul.f32 1.442695, %v285_v1 }
 0x15d   : > { %1495 = vpow2.f32 %v299_v30 }
 0x163   : > { %v1808_v32 = vpop.eup %1495 }
 0x164   : > { %v321_v33 = vsel %vm254_vm1, %v1808_v32, 0.0 }
 0x165   : > { %319 = vadd.xlane.f32.xlu0 %v318_v29 }
 0x172   : > { %325 = vadd.xlane.f32.xlu1 %v324_v31 }
 0x178   : > { %322 = vadd.xlane.f32.xlu2 %v321_v33 }
 0x179   : > { %910 = vrot.lane.b32.xlu0 %v1677_v2, %s1622_s22 }
 0x181   : > { %912 = vrot.lane.b32.xlu0 %v1700_v5, %s1622_s22 }
 0x189   : > { %668 = vrot.lane.b32.xlu0 %v1690_v3, %s1621_s21 }
 0x18a   : > { %v305_v34 = vpop.xlane.xlu2 %304 }
 0x18b   : > { %1497 = vrcp.f32 %v305_v34  ;;  %914 = vrot.lane.b32.xlu1 %v1705_v6, %s1622_s22 }
 0x190   : > { %664 = vrot.lane.b32.xlu2 %v1700_v5, %s1621_s21 }
 0x191   : > { %v1498_v35 = vpop.eup %1497  ;;  %918 = vrot.lane.b32.xlu0 %v1693_v4, %s1622_s22 }
 0x192   : > { %v308_v2 = vpop.xlane.xlu0 %307  ;;  %v335_v37 = vmul.f32 %v1498_v35, %v1767_v51  ;;  %v1855_v51 = vmul.f32 0.35355338, %v477_v42 }
 0x193   : > { %1499 = vrcp.f32 %v308_v2  ;;  %670 = vrot.lane.b32.xlu1 %v1693_v4, %s1621_s21 }
 0x194   : > { %1376 = vmatmul.msk.f32.vlgmr.msra.gmra.mxu1 %vm254_vm1, %v335_v37 }
 0x198   : > { %666 = vrot.lane.b32.xlu2 %v1705_v6, %s1621_s21 }
 0x199   : > { %v1500_v38 = vpop.eup %1499  ;;  %674 = vrot.lane.b32.xlu0 %v1728_v9, %s1621_s21 }
 0x19a   : > { %v311_v5 = vpop.xlane.xlu2 %310  ;;  %v336_v39 = vmul.f32 %v1500_v38, %v1771_v56 }
 0x19b   : > { %1501 = vrcp.f32 %v311_v5  ;;  %920 = vrot.lane.b32.xlu1 %v1721_v8, %s1622_s22 }
 0x19c   : > { %1377 = vmatmul.msk.f32.gmra.mxu1 %vm254_vm1, %v336_v39 }
 0x1a0   : > { %916 = vrot.lane.b32.xlu2 %v1690_v3, %s1622_s22 }
 0x1a1   : > { %v1502_v4 = vpop.eup %1501  ;;  %924 = vrot.lane.b32.xlu0 %v1735_v10, %s1622_s22 }
 0x1a2   : > { %v314_v6 = vpop.xlane.xlu1 %313  ;;  %v337_v41 = vmul.f32 %v1502_v4, %v1775_v61 }
 0x1a3   : > { %1503 = vrcp.f32 %v314_v6  ;;  %676 = vrot.lane.b32.xlu1 %v1735_v10, %s1621_s21 }
 0x1a4   : > { %1378 = vmatmul.msk.f32.gmra.mxu1 %vm254_vm1, %v337_v41 }
 0x1a5   : > { %v679_v43 = vpop.permute.xlu0 %678 }
 0x1a6   : > { %1403 = vmatpush.xpose.msk.msrb.mxu1 %vm174_vm0, %v679_v43 }
 0x1a8   : > { %672 = vrot.lane.b32.xlu2 %v1721_v8, %s1621_s21  ;;  %v483_v8 = vpop.f32.mrf.mxu2 }
 0x1a9   : > { %v1504_v3 = vpop.eup %1503  ;;  %v1865_v56 = vmul.f32 0.35355338, %v483_v8 }
 0x1aa   : > { %v317_v44 = vpop.xlane.xlu2 %316  ;;  %v338_v45 = vmul.f32 %v1504_v3, %v1779_v14 }
 0x1ab   : > { %1505 = vrcp.f32 %v317_v44  ;;  %v515_v61 = vsel %vm254_vm1, %v1865_v56, -inf }
 0x1ac   : > { %1379 = vmatmul.msk.f32.gmra.mxu1 %vm254_vm1, %v338_v45 }
 0x1ad   : > { %v663_v57 = vpop.permute.xlu0 %662 }
 0x1b0   : > { %922 = vrot.lane.b32.xlu2 %v1728_v9, %s1622_s22  ;;  %v486_v50 = vpop.f32.mrf.mxu2  ;;  %v509_v9 = vsel %vm254_vm1, %v1855_v51, -inf }
 0x1b1   : > { %v1506_v10 = vpop.eup %1505  ;;  %v1863_v55 = vmul.f32 0.35355338, %v486_v50 }
 0x1b2   : > { %v339_v47 = vmul.f32 %v1506_v10, %v1786_v18  ;;  %v929_v48 = vpop.permute.xlu2 %928 }
 0x1b3   : > { %1420 = vmatpush.xpose.msk.msrb.mxu0 %vm174_vm0, %v929_v48  ;;  %v518_v59 = vsel %vm254_vm1, %v1863_v55, -inf }
 0x1b4   : > { %1380 = vmatmul.msk.f32.gmra.mxu1 %vm254_vm1, %v339_v47 }
 0x1ba   : > { %v927_v49 = vpop.permute.xlu1 %926 }
 0x1bb   : > { %1421 = vmatpush.xpose.msk.msrb.mxu0 %vm174_vm0, %v927_v49 }
 0x1be   : > { %v489_v52 = vpop.f32.mrf.mxu2 }
 0x1bf   : > { %v1881_v17 = vmul.f32 0.35355338, %v489_v52 }
 0x1c1   : > { %v521_v18 = vsel %vm254_vm1, %v1881_v17, -inf }
 0x1c6   : > { %v492_v58 = vpop.f32.mrf.mxu2 }
 0x1c7   : > { %v1873_v62 = vmul.f32 0.35355338, %v492_v58 }
 0x1c9   : > { %v524_v12 = vsel %vm254_vm1, %v1873_v62, -inf }
 0x1cb   : > { %510 = vmax.xlane.f32.xlu0 %v509_v9 }
 0x1cd   : > { %507 = vmax.xlane.f32.xlu1 %v506_v54 }
 0x1d3   : > { %519 = vmax.xlane.f32.xlu0 %v518_v59 }
 0x1d5   : > { %516 = vmax.xlane.f32.xlu1 %v515_v61 }
 0x1d8   : > { %v320_v63 = vpop.xlane.xlu0 %319 }
 0x1d9   : > { %1507 = vrcp.f32 %v320_v63  ;;  %504 = vmax.xlane.f32.xlu2 %v503_v11 }
 0x1db   : > { %525 = vmax.xlane.f32.xlu0 %v524_v12 }
 0x1df   : > { %v1508_v14 = vpop.eup %1507 }
 0x1e0   : > { %v340_v16 = vmul.f32 %v1508_v14, %v1799_v26 }
 0x1e1   : > { %513 = vmax.xlane.f32.xlu2 %v512_v15 }
 0x1e2   : > { %1381 = vmatmul.msk.f32.gmra.mxu1 %vm254_vm1, %v340_v16 }
 0x1e5   : > { %v326_v21 = vpop.xlane.xlu1 %325 }
 0x1e9   : > { %522 = vmax.xlane.f32.xlu2 %v521_v18 }
 0x1eb   : > { %v911_v19 = vpop.permute.xlu0 %910  ;;  %v323_v20 = vpop.xlane.xlu2 %322 }
 0x1ec   : > { %1509 = vrcp.f32 %v323_v20  ;;  %1422 = vmatmul.msk.f32.vlgmr.msrb.gmra.mxu0 %vm174_vm0, %v911_v19 }
 0x1ed   : > { %1511 = vrcp.f32 %v326_v21 }
 0x1f2   : > { %v1510_v22 = vpop.eup %1509 }
 0x1f3   : > { %v913_v23 = vpop.permute.xlu0 %912  ;;  %v341_v24 = vmul.f32 %v1510_v22, %v1808_v32  ;;  %v665_v25 = vpop.permute.xlu2 %664 }
 0x1f4   : > { %1423 = vmatmul.msk.f32.gmra.mxu0 %vm174_vm0, %v913_v23  ;;  %v1512_v26 = vpop.eup %1511 }
 0x1f5   : > { %1382 = vmatmul.msk.f32.gmra.mxu1 %vm254_vm1, %v341_v24  ;;  %v342_v27 = vmul.f32 %v1512_v26, %v1804_v0 }
 0x1fb   : > { %v667_v28 = vpop.permute.xlu2 %666  ;;  %v669_v1 = vpop.permute.xlu0 %668 }
 0x1fd   : > { %v915_v29 = vpop.permute.xlu1 %914  ;;  %1383 = vmatmul.msk.f32.gmra.mxu1 %vm254_vm1, %v342_v27 }
 0x1fe   : > { %1424 = vmatmul.msk.f32.gmra.mxu0 %vm174_vm0, %v915_v29 }
 0x201   : > { %1467 = vrot.lane.b32.xlu2 %v1713_v7, %s1623_s23 }
 0x203   : > { %v917_v30 = vpop.permute.xlu2 %916  ;;  %v919_v32 = vpop.permute.xlu0 %918 }
 0x205   : > { %1404 = vmatmul.msk.f32.vlgmr.msrb.gmra.mxu1 %vm174_vm0, %v663_v57  ;;  %v671_v31 = vpop.permute.xlu1 %670 }
 0x206   : > { %1425 = vmatmul.msk.f32.gmra.mxu0 %vm174_vm0, %v917_v30 }
 0x20b   : > { %v673_v33 = vpop.permute.xlu2 %672  ;;  %v675_v34 = vpop.permute.xlu0 %674 }
 0x20d   : > { %1405 = vmatmul.msk.f32.gmra.mxu1 %vm174_vm0, %v665_v25  ;;  %v921_v0 = vpop.permute.xlu1 %920 }
 0x20e   : > { %1426 = vmatmul.msk.f32.gmra.mxu0 %vm174_vm0, %v919_v32 }
 0x211   : > { %v1906_v2 = vpop.f32.mrf.mxu1 }
 0x213   : > { %v923_v35 = vpop.permute.xlu2 %922  ;;  %v925_v36 = vpop.permute.xlu0 %924 }
 0x215   : > { %1406 = vmatmul.msk.f32.gmra.mxu1 %vm174_vm0, %v667_v28  ;;  %v677_v37 = vpop.permute.xlu1 %676 }
 0x216   : > { %1427 = vmatmul.msk.f32.gmra.mxu0 %vm174_vm0, %v921_v0 }
 0x219   : > { %v1909_v38 = vpop.f32.mrf.mxu1 }
 0x21d   : > { %1407 = vmatmul.msk.f32.gmra.mxu1 %vm174_vm0, %v669_v1 }
 0x21e   : > { %1428 = vmatmul.msk.f32.gmra.mxu0 %vm174_vm0, %v923_v35 }
 0x221   : > { %v1911_v39 = vpop.f32.mrf.mxu1 }
 0x225   : > { %1408 = vmatmul.msk.f32.gmra.mxu1 %vm174_vm0, %v671_v31 }
 0x226   : > { %1429 = vmatmul.msk.f32.gmra.mxu0 %vm174_vm0, %v925_v36 }
 0x229   : > { %v1913_v41 = vpop.f32.mrf.mxu1 }
 0x22d   : > { %1409 = vmatmul.msk.f32.gmra.mxu1 %vm174_vm0, %v673_v33 }
 0x231   : > { %v1919_v3 = vpop.f32.mrf.mxu1 }
 0x235   : > { %1410 = vmatmul.msk.f32.gmra.mxu1 %vm174_vm0, %v675_v34 }
 0x23d   : > { %1411 = vmatmul.msk.f32.gmra.mxu1 %vm174_vm0, %v677_v37 }
 0x23e   : > { %v511_v58 = vpop.xlane.xlu0 %510 }
 0x23f   : > { %v529_v12 = vsub.f32 %v1855_v51, %v511_v58 }
 0x240   : > { %v508_v61 = vpop.xlane.xlu1 %507 }
 0x241   : > { %v528_v14 = vsub.f32 %v1857_v53, %v508_v61  ;;  %v539_v15 = vmul.f32 1.442695, %v529_v12 }
 0x243   : > { %v537_v16 = vmul.f32 1.442695, %v528_v14 }
 0x246   : > { %v520_v34 = vpop.xlane.xlu0 %519 }
 0x248   : > { %v517_v1 = vpop.xlane.xlu1 %516 }
 0x249   : > { %v531_v33 = vsub.f32 %v1865_v56, %v517_v1 }
 0x24b   : > { %v543_v35 = vmul.f32 1.442695, %v531_v33 }
 0x24c   : > { %v505_v5 = vpop.xlane.xlu2 %504 }
 0x24d   : > { %v527_v54 = vsub.f32 %v1869_v60, %v505_v5 }
 0x24e   : > { %v526_v56 = vpop.xlane.xlu0 %525 }
 0x24f   : > { %v535_v59 = vmul.f32 1.442695, %v527_v54 }
 0x254   : > { %v514_v40 = vpop.xlane.xlu2 %513 }
 0x255   : > { %v530_v4 = vsub.f32 %v498_v13, %v514_v40 }
 0x257   : > { %v541_v6 = vmul.f32 1.442695, %v530_v4 }
 0x259   : > { %1513 = vpow2.f32 %v541_v6 }
 0x25a   : > { %1515 = vpow2.f32 %v535_v59 }
 0x25b   : > { %1517 = vpow2.f32 %v539_v15 }
 0x25c   : > { %1519 = vpow2.f32 %v537_v16  ;;  %v523_v36 = vpop.xlane.xlu2 %522 }
 0x25d   : > { %1521 = vpow2.f32 %v543_v35  ;;  %v533_v4 = vsub.f32 %v1881_v17, %v523_v36 }
 0x25f   : > { %v1915_v42 = vpop.eup %1513  ;;  %v1921_v45 = vpop.f32.mrf.mxu1 }
 0x260   : > { %v560_v43 = vsel %vm254_vm1, %v1915_v42, 0.0  ;;  %v1948_v19 = vpop.eup %1515 }
 0x261   : > { %561 = vadd.xlane.f32.xlu2 %v560_v43  ;;  %v551_v53 = vsel %vm254_vm1, %v1948_v19, 0.0  ;;  %v1956_v22 = vpop.eup %1517  ;;  %v547_v43 = vmul.f32 1.442695, %v533_v4 }
 0x262   : > { %v1958_v24 = vpop.eup %1519  ;;  %v557_v27 = vsel %vm254_vm1, %v1956_v22, 0.0 }
 0x263   : > { %v554_v28 = vsel %vm254_vm1, %v1958_v24, 0.0  ;;  %1523 = vpow2.f32 %v547_v43 }
 0x269   : > { %v967_v44 = vpop.f32.mrf.mxu0 }
 0x26a   : > { %v1923_v46 = vmul.f32 0.35355338, %v967_v44 }
 0x26c   : > { %v999_v10 = vsel %vm254_vm1, %v1923_v46, -inf }
 0x26d   : > { %1000 = vmax.xlane.f32.xlu1 %v999_v10  ;;  %v1982_v10 = vpop.eup %1521 }
 0x26e   : > { %v1989_v17 = vpop.eup %1523 }
 0x271   : > { %v970_v47 = vpop.f32.mrf.mxu0 }
 0x272   : > { %v1927_v48 = vmul.f32 0.35355338, %v970_v47  ;;  %v1929_v8 = vpop.f32.mrf.mxu1  ;;  %v534_v47 = vsub.f32 %v1873_v62, %v526_v56 }
 0x274   : > { %v1002_v49 = vsel %vm254_vm1, %v1927_v48, -inf }
 0x275   : > { %1003 = vmax.xlane.f32.xlu0 %v1002_v49  ;;  %v563_v49 = vsel %vm254_vm1, %v1982_v10, 0.0 }
 0x27a   : > { %v1933_v50 = vpop.f32.mrf.mxu1 }
 0x27b   : > { %v973_v52 = vpop.f32.mrf.mxu0 }
 0x27c   : > { %v1935_v9 = vmul.f32 0.35355338, %v973_v52  ;;  %v549_v52 = vmul.f32 1.442695, %v534_v47 }
 0x27e   : > { %v1005_v57 = vsel %vm254_vm1, %v1935_v9, -inf  ;;  %1525 = vpow2.f32 %v549_v52 }
 0x27f   : > { %1006 = vmax.xlane.f32.xlu0 %v1005_v57  ;;  %v569_v57 = vsel %vm254_vm1, %v1989_v17, 0.0 }
 0x282   : > { %v1940_v63 = vpop.f32.mrf.mxu1 }
 0x283   : > { %v976_v11 = vpop.f32.mrf.mxu0  ;;  %v2029_v36 = vmul.f32 0.35355338, %v1940_v63 }
 0x284   : > { %v1943_v13 = vmul.f32 0.35355338, %v976_v11  ;;  %v1993_v59 = vpop.eup %1525 }
 0x285   : > { %v572_v11 = vsel %vm254_vm1, %v1993_v59, 0.0  ;;  %v751_v4 = vsel %vm254_vm1, %v2029_v36, -inf }
 0x286   : > { %v1008_v60 = vsel %vm254_vm1, %v1943_v13, -inf }
 0x287   : > { %1009 = vmax.xlane.f32.xlu1 %v1008_v60 }
 0x28a   : > { %v722_v18 = vpop.f32.mrf.mxu1 }
 0x28b   : > { %v979_v20 = vpop.f32.mrf.mxu0  ;;  %v2001_v12 = vmul.f32 0.35355338, %v722_v18 }
 0x28c   : > { %v1950_v21 = vmul.f32 0.35355338, %v979_v20 }
 0x28d   : > { %v754_v14 = vsel %vm254_vm1, %v2001_v12, -inf }
 0x28e   : > { %v1011_v51 = vsel %vm254_vm1, %v1950_v21, -inf }
 0x28f   : > { %1012 = vmax.xlane.f32.xlu0 %v1011_v51  ;;  %552 = vadd.xlane.f32.xlu1 %v551_v53  ;;  %v532_v53 = vsub.f32 %v1863_v55, %v520_v34 }
 0x292   : > { %v725_v23 = vpop.f32.mrf.mxu1 }
 0x293   : > { %v982_v25 = vpop.f32.mrf.mxu0  ;;  %v2005_v60 = vmul.f32 0.35355338, %v725_v23  ;;  %v545_v23 = vmul.f32 1.442695, %v532_v53 }
 0x294   : > { %v1960_v26 = vmul.f32 0.35355338, %v982_v25 }
 0x295   : > { %v757_v15 = vsel %vm254_vm1, %v2005_v60, -inf }
 0x296   : > { %v1014_v29 = vsel %vm254_vm1, %v1960_v26, -inf }
 0x297   : > { %558 = vadd.xlane.f32.xlu0 %v557_v27  ;;  %555 = vadd.xlane.f32.xlu1 %v554_v28  ;;  %v1468_v27 = vpop.permute.xlu2 %1467 }
 0x298   : > { %1015 = vmax.xlane.f32.xlu2 %v1014_v29  ;;  %v1469_v28 = vunpack.i.l.bf16 %v1468_v27 }
 0x29a   : > { %v1968_v30 = vpop.f32.mrf.mxu1  ;;  %635 = vmatpush.msra.mxu3 %v1469_v28 }
 0x29b   : > { %v985_v31 = vpop.f32.mrf.mxu0 }
 0x29c   : > { %v1970_v32 = vmul.f32 0.35355338, %v985_v31  ;;  %v1470_v31 = vunpack.i.h.bf16 %v1468_v27 }
 0x29e   : > { %v1017_v0 = vsel %vm254_vm1, %v1970_v32, -inf  ;;  %636 = vmatpush.msra.mxu3 %v1470_v31 }
 0x2a0   : > { %1018 = vmax.xlane.f32.xlu2 %v1017_v0 }
 0x2a2   : > { %v731_v37 = vpop.f32.mrf.mxu1 }
 0x2a3   : > { %v988_v5 = vpop.f32.mrf.mxu0  ;;  %v2009_v16 = vmul.f32 0.35355338, %v731_v37 }
 0x2a4   : > { %v1975_v40 = vmul.f32 0.35355338, %v988_v5 }
 0x2a5   : > { %v763_v20 = vsel %vm254_vm1, %v2009_v16, -inf }
 0x2a6   : > { %v1020_v6 = vsel %vm254_vm1, %v1975_v40, -inf }
 0x2a7   : > { %1021 = vmax.xlane.f32.xlu1 %v1020_v6  ;;  %v2036_v6 = vmul.f32 0.35355338, %v1968_v30 }
 0x2aa   : > { %v1980_v44 = vpop.f32.mrf.mxu1 }
 0x2ab   : > { %v2042_v52 = vmul.f32 0.35355338, %v1980_v44 }
 0x2af   : > { %564 = vadd.xlane.f32.xlu1 %v563_v49  ;;  %v760_v49 = vsel %vm254_vm1, %v2036_v6, -inf }
 0x2b2   : > { %v1987_v54 = vpop.f32.mrf.mxu1 }
 0x2b3   : > { %v2053_v44 = vmul.f32 0.35355338, %v1987_v54 }
 0x2b7   : > { %570 = vadd.xlane.f32.xlu1 %v569_v57 }
 0x2ba   : > { %v740_v58 = vpop.f32.mrf.mxu1 }
 0x2bb   : > { %v1995_v61 = vmul.f32 0.35355338, %v740_v58 }
 0x2bd   : > { %v772_v62 = vsel %vm254_vm1, %v1995_v61, -inf }
 0x2be   : > { %773 = vmax.xlane.f32.xlu2 %v772_v62 }
 0x2bf   : > { %573 = vadd.xlane.f32.xlu1 %v572_v11 }
 0x2c7   : > { %755 = vmax.xlane.f32.xlu1 %v754_v14 }
 0x2cf   : > { %758 = vmax.xlane.f32.xlu1 %v757_v15 }
 0x2d7   : > { %764 = vmax.xlane.f32.xlu1 %v763_v20  ;;  %v769_v20 = vsel %vm254_vm1, %v2053_v44, -inf }
 0x2e0   : > { %v1001_v51 = vpop.xlane.xlu1 %1000 }
 0x2e1   : > { %v1023_v18 = vsub.f32 %v1923_v46, %v1001_v51  ;;  %v562_v51 = vpop.xlane.xlu2 %561 }
 0x2e3   : > { %v1031_v25 = vmul.f32 1.442695, %v1023_v18 }
 0x2e5   : > { %1527 = vpow2.f32 %v1031_v25 }
 0x2e6   : > { %1529 = vpow2.f32 %v545_v23 }
 0x2e8   : > { %v1004_v29 = vpop.xlane.xlu0 %1003 }
 0x2e9   : > { %v1024_v1 = vsub.f32 %v1927_v48, %v1004_v29 }
 0x2eb   : > { %v2016_v33 = vpop.eup %1527  ;;  %v1033_v0 = vmul.f32 1.442695, %v1024_v1 }
 0x2ec   : > { %v1047_v35 = vsel %vm254_vm1, %v2016_v33, 0.0  ;;  %v2020_v55 = vpop.eup %1529 }
 0x2ed   : > { %1531 = vpow2.f32 %v1033_v0  ;;  %1048 = vadd.xlane.f32.xlu0 %v1047_v35  ;;  %v566_v34 = vsel %vm254_vm1, %v2020_v55, 0.0 }
 0x2f2   : > { %v1007_v37 = vpop.xlane.xlu0 %1006 }
 0x2f3   : > { %v2022_v46 = vpop.eup %1531  ;;  %v1025_v35 = vsub.f32 %v1935_v9, %v1007_v37 }
 0x2f4   : > { %v1050_v48 = vsel %vm254_vm1, %v2022_v46, 0.0 }
 0x2f5   : > { %567 = vadd.xlane.f32.xlu0 %v566_v34  ;;  %1051 = vadd.xlane.f32.xlu2 %v1050_v48 }
 0x2fa   : > { %v2031_v5 = vpop.xlane.xlu1 %1009 }
 0x2fd   : > { %752 = vmax.xlane.f32.xlu0 %v751_v4  ;;  %v1035_v4 = vmul.f32 1.442695, %v1025_v35 }
 0x302   : > { %v1013_v43 = vpop.xlane.xlu0 %1012  ;;  %v553_v56 = vpop.xlane.xlu1 %552 }
 0x303   : > { %v1027_v47 = vsub.f32 %v1950_v21, %v1013_v43  ;;  %1533 = vrcp.f32 %v553_v56  ;;  %v766_v21 = vsel %vm254_vm1, %v2042_v52, -inf }
 0x305   : > { %v1039_v63 = vmul.f32 1.442695, %v1027_v47  ;;  %761 = vmax.xlane.f32.xlu0 %v760_v49 }
 0x307   : > { %1535 = vpow2.f32 %v1039_v63 }
 0x309   : > { %v1534_v57 = vpop.eup %1533 }
 0x30a   : > { %v556_v58 = vpop.xlane.xlu1 %555  ;;  %v583_v62 = vmul.f32 %v1534_v57, %v1948_v19  ;;  %v559_v14 = vpop.xlane.xlu0 %558 }
 0x30b   : > { %1537 = vrcp.f32 %v556_v58 }
 0x30c   : > { %1394 = vmatmul.msk.f32.vlgmr.msra.gmra.mxu3 %vm254_vm1, %v583_v62  ;;  %1539 = vrcp.f32 %v559_v14 }
 0x30d   : > { %v2048_v30 = vpop.eup %1535  ;;  %767 = vmax.xlane.f32.xlu0 %v766_v21  ;;  %1541 = vrcp.f32 %v562_v51  ;;  %v1016_v21 = vpop.xlane.xlu2 %1015 }
 0x30e   : > { %v1059_v11 = vsel %vm254_vm1, %v2048_v30, 0.0 }
 0x30f   : > { %1060 = vadd.xlane.f32.xlu2 %v1059_v11 }
 0x311   : > { %v1538_v15 = vpop.eup %1537 }
 0x312   : > { %v584_v19 = vmul.f32 %v1538_v15, %v1958_v24  ;;  %v1540_v18 = vpop.eup %1539 }
 0x313   : > { %v585_v25 = vmul.f32 %v1540_v18, %v1956_v22  ;;  %v1542_v54 = vpop.eup %1541 }
 0x314   : > { %1395 = vmatmul.msk.f32.gmra.mxu3 %vm254_vm1, %v584_v19  ;;  %v586_v24 = vmul.f32 %v1542_v54, %v1915_v42 }
 0x315   : > { %770 = vmax.xlane.f32.xlu0 %v769_v20  ;;  %v1019_v54 = vpop.xlane.xlu2 %1018 }
 0x31a   : > { %v2059_v53 = vpop.xlane.xlu1 %1021 }
 0x31c   : > { %1396 = vmatmul.msk.f32.gmra.mxu3 %vm254_vm1, %v585_v25 }
 0x322   : > { %v565_v27 = vpop.xlane.xlu1 %564 }
 0x323   : > { %1543 = vrcp.f32 %v565_v27 }
 0x324   : > { %1397 = vmatmul.msk.f32.gmra.mxu3 %vm254_vm1, %v586_v24 }
 0x329   : > { %v1544_v23 = vpop.eup %1543  ;;  %1472 = vrot.lane.b32.xlu0 %v1713_v7, %s1624_s24 }
 0x32a   : > { %v571_v28 = vpop.xlane.xlu1 %570  ;;  %v587_v29 = vmul.f32 %v1544_v23, %v1982_v10 }
 0x32c   : > { %1398 = vmatmul.msk.f32.gmra.mxu3 %vm254_vm1, %v587_v29 }
 0x332   : > { %v574_v1 = vpop.xlane.xlu1 %573 }
 0x33a   : > { %v756_v22 = vpop.xlane.xlu1 %755 }
 0x33b   : > { %v776_v31 = vsub.f32 %v2001_v12, %v756_v22  ;;  %v1028_v22 = vsub.f32 %v1960_v26, %v1016_v21  ;;  %v1029_v26 = vsub.f32 %v1970_v32, %v1019_v54  ;;  %v1026_v21 = vsub.f32 %v1943_v13, %v2031_v5 }
 0x33d   : > { %v785_v0 = vmul.f32 1.442695, %v776_v31  ;;  %v1041_v35 = vmul.f32 1.442695, %v1028_v22 }
 0x33f   : > { %1545 = vpow2.f32 %v785_v0 }
 0x342   : > { %v759_v42 = vpop.xlane.xlu1 %758 }
 0x343   : > { %v777_v34 = vsub.f32 %v2005_v60, %v759_v42 }
 0x345   : > { %v2071_v48 = vpop.eup %1545  ;;  %v787_v7 = vmul.f32 1.442695, %v777_v34 }
 0x346   : > { %v802_v10 = vsel %vm254_vm1, %v2071_v48, 0.0 }
 0x347   : > { %1547 = vpow2.f32 %v787_v7  ;;  %803 = vadd.xlane.f32.xlu2 %v802_v10  ;;  %v1610_v7 = vld [vmem:[%s1659_s15] sm:$0xff] }
 0x348   : > { %1549 = vpow2.f32 %v1035_v4  ;;  %v1609_v4 = vld [vmem:[%s1659_s15 + $0x8] sm:$0xff] }
 0x349   : > { %v1476_v10 = vpack.i.bf16 %v1610_v7, %v1609_v4 }
 0x34a   : > { %v765_v11 = vpop.xlane.xlu1 %764 }
 0x34d   : > { %v2075_v43 = vpop.eup %1547 }
 0x34e   : > { %v805_v12 = vsel %vm254_vm1, %v2075_v43, 0.0  ;;  %v2079_v56 = vpop.eup %1549 }
 0x34f   : > { %806 = vadd.xlane.f32.xlu2 %v805_v12  ;;  %v1053_v9 = vsel %vm254_vm1, %v2079_v56, 0.0 }
 0x353   : > { %1054 = vadd.xlane.f32.xlu0 %v1053_v9  ;;  %v1043_v9 = vmul.f32 1.442695, %v1029_v26 }
 0x360   : > { %v2083_v60 = vpop.xlane.xlu0 %1048 }
 0x368   : > { %v568_v37 = vpop.xlane.xlu0 %567 }
 0x369   : > { %1551 = vrcp.f32 %v568_v37 }
 0x36a   : > { %1553 = vrcp.f32 %v571_v28  ;;  %v774_v28 = vpop.xlane.xlu2 %773 }
 0x36b   : > { %v782_v31 = vsub.f32 %v1995_v61, %v774_v28 }
 0x36d   : > { %v797_v42 = vmul.f32 1.442695, %v782_v31 }
 0x36f   : > { %v1552_v47 = vpop.eup %1551 }
 0x370   : > { %v753_v49 = vpop.xlane.xlu0 %752  ;;  %v588_v63 = vmul.f32 %v1552_v47, %v2020_v55  ;;  %v1554_v62 = vpop.eup %1553  ;;  %v779_v55 = vsub.f32 %v2009_v16, %v765_v11 }
 0x371   : > { %v775_v57 = vsub.f32 %v2029_v36, %v753_v49  ;;  %v589_v15 = vmul.f32 %v1554_v62, %v1989_v17 }
 0x372   : > { %1399 = vmatmul.msk.f32.gmra.mxu3 %vm254_vm1, %v588_v63  ;;  %v791_v25 = vmul.f32 1.442695, %v779_v55  ;;  %v1052_v54 = vpop.xlane.xlu2 %1051 }
 0x373   : > { %v783_v58 = vmul.f32 1.442695, %v775_v57 }
 0x375   : > { %1555 = vpow2.f32 %v783_v58 }
 0x376   : > { %1557 = vrcp.f32 %v574_v1 }
 0x378   : > { %v762_v14 = vpop.xlane.xlu0 %761 }
 0x379   : > { %v778_v19 = vsub.f32 %v2036_v6, %v762_v14  ;;  %v1037_v14 = vmul.f32 1.442695, %v1026_v21 }
 0x37a   : > { %1400 = vmatmul.msk.f32.gmra.mxu3 %vm254_vm1, %v589_v15  ;;  %v1030_v15 = vsub.f32 %v1975_v40, %v2059_v53 }
 0x37b   : > { %v2091_v20 = vpop.eup %1555  ;;  %v789_v36 = vmul.f32 1.442695, %v778_v19 }
 0x37c   : > { %v799_v51 = vsel %vm254_vm1, %v2091_v20, 0.0  ;;  %v1558_v18 = vpop.eup %1557  ;;  %v1045_v55 = vmul.f32 1.442695, %v1030_v15 }
 0x37d   : > { %1559 = vpow2.f32 %v789_v36  ;;  %800 = vadd.xlane.f32.xlu1 %v799_v51  ;;  %v590_v17 = vmul.f32 %v1558_v18, %v1993_v59 }
 0x37e   : > { %1561 = vpow2.f32 %v791_v25 }
 0x380   : > { %v768_v27 = vpop.xlane.xlu0 %767 }
 0x381   : > { %v780_v24 = vsub.f32 %v2042_v52, %v768_v27 }
 0x382   : > { %1401 = vmatmul.msk.f32.gmra.mxu3 %vm254_vm1, %v590_v17  ;;  %v2150_v27 = vpop.xlane.xlu2 %1060 }
 0x383   : > { %v2098_v6 = vpop.eup %1559  ;;  %v793_v23 = vmul.f32 1.442695, %v780_v24 }
 0x384   : > { %v808_v16 = vsel %vm254_vm1, %v2098_v6, 0.0  ;;  %v2103_v1 = vpop.eup %1561 }
 0x385   : > { %809 = vadd.xlane.f32.xlu2 %v808_v16  ;;  %1563 = vpow2.f32 %v793_v23  ;;  %v811_v52 = vsel %vm254_vm1, %v2103_v1, 0.0 }
 0x388   : > { %v771_v29 = vpop.xlane.xlu0 %770 }
 0x389   : > { %v781_v59 = vsub.f32 %v2053_v44, %v771_v29 }
 0x38b   : > { %v795_v0 = vmul.f32 1.442695, %v781_v59  ;;  %v2110_v34 = vpop.eup %1563 }
 0x38c   : > { %v814_v12 = vsel %vm254_vm1, %v2110_v34, 0.0 }
 0x38d   : > { %1565 = vpow2.f32 %v795_v0  ;;  %812 = vadd.xlane.f32.xlu2 %v811_v52 }
 0x38e   : > { %1567 = vpow2.f32 %v1041_v35 }
 0x38f   : > { %1569 = vpow2.f32 %v797_v42  ;;  %v638_v49 = vpop.f32.mrf.mxu3 }
 0x390   : > { %1571 = vpow2.f32 %v1043_v9 }
 0x391   : > { %1573 = vpow2.f32 %v1037_v14 }
 0x392   : > { %1575 = vpow2.f32 %v1045_v55 }
 0x393   : > { %v2114_v44 = vpop.eup %1565 }
 0x394   : > { %v817_v61 = vsel %vm254_vm1, %v2114_v44, 0.0  ;;  %v2121_v37 = vpop.eup %1567 }
 0x395   : > { %818 = vadd.xlane.f32.xlu0 %v817_v61  ;;  %815 = vadd.xlane.f32.xlu2 %v814_v12  ;;  %v2123_v47 = vpop.eup %1569  ;;  %v1062_v32 = vsel %vm254_vm1, %v2121_v37, 0.0 }
 0x396   : > { %1477 = vrot.lane.b32.xlu1 %v1476_v10, %s1625_s25  ;;  %v820_v63 = vsel %vm254_vm1, %v2123_v47, 0.0  ;;  %v2129_v57 = vpop.eup %1571 }
 0x397   : > { %v641_v58 = vpop.f32.mrf.mxu3  ;;  %v1065_v62 = vsel %vm254_vm1, %v2129_v57, 0.0  ;;  %v2139_v36 = vpop.eup %1573 }
 0x398   : > { %v1056_v13 = vsel %vm254_vm1, %v2139_v36, 0.0  ;;  %v2144_v5 = vpop.eup %1575 }
 0x399   : > { %v1068_v40 = vsel %vm254_vm1, %v2144_v5, 0.0 }
 0x39b   : > { %v1473_v53 = vpop.permute.xlu0 %1472 }
 0x39c   : > { %v1474_v18 = vunpack.i.l.bf16 %v1473_v53  ;;  %v1475_v25 = vunpack.i.h.bf16 %v1473_v53 }
 0x39d   : > { %1063 = vadd.xlane.f32.xlu2 %v1062_v32  ;;  %821 = vadd.xlane.f32.xlu0 %v820_v63 }
 0x39e   : > { %883 = vmatpush.msrb.mxu3 %v1474_v18 }
 0x39f   : > { %v644_v11 = vpop.f32.mrf.mxu3 }
 0x3a0   : > { %884 = vmatpush.msrb.mxu3 %v1475_v25 }
 0x3a5   : > { %1066 = vadd.xlane.f32.xlu2 %v1065_v62 }
 0x3a7   : > { %v647_v19 = vpop.f32.mrf.mxu3 }
 0x3af   : > { %v650_v51 = vpop.f32.mrf.mxu3 }
 0x3b1   : > { %1168 = vrot.lane.b32.xlu0 %v641_v58, %s1626_s26 }
 0x3b9   : > { %1172 = vrot.lane.b32.xlu0 %v647_v19, %s1626_s26 }
 0x3ba   : > { %v804_v17 = vpop.xlane.xlu2 %803 }
 0x3bd   : > { %1166 = vrot.lane.b32.xlu2 %v638_v49, %s1626_s26 }
 0x3c0   : > { %1057 = vadd.xlane.f32.xlu1 %v1056_v13 }
 0x3c2   : > { %v807_v28 = vpop.xlane.xlu2 %806 }
 0x3c5   : > { %1174 = vrot.lane.b32.xlu2 %v650_v51, %s1626_s26 }
 0x3c8   : > { %1069 = vadd.xlane.f32.xlu1 %v1068_v40 }
 0x3e1   : > { %1170 = vrot.lane.b32.xlu1 %v644_v11, %s1626_s26 }
 0x3f0   : > { %v801_v24 = vpop.xlane.xlu1 %800 }
 0x3f1   : > { %1577 = vrcp.f32 %v801_v24 }
 0x3f2   : > { %1579 = vrcp.f32 %v804_v17 }
 0x3f3   : > { %1581 = vrcp.f32 %v807_v28 }
 0x3f4   : > { %1583 = vrcp.f32 %v2083_v60  ;;  %v1055_v60 = vpop.xlane.xlu0 %1054 }
 0x3f5   : > { %v653_v16 = vpop.f32.mrf.mxu3 }
 0x3f6   : > { %1176 = vrot.lane.b32.xlu0 %v653_v16, %s1626_s26 }
 0x3f7   : > { %v1578_v23 = vpop.eup %1577 }
 0x3f8   : > { %v831_v29 = vmul.f32 %v1578_v23, %v2091_v20  ;;  %v1580_v59 = vpop.eup %1579  ;;  %v810_v31 = vpop.xlane.xlu2 %809 }
 0x3f9   : > { %v832_v0 = vmul.f32 %v1580_v59, %v2071_v48  ;;  %v1582_v52 = vpop.eup %1581  ;;  %1585 = vrcp.f32 %v810_v31 }
 0x3fa   : > { %1412 = vmatmul.msk.f32.vlgmr.msrb.gmra.mxu3 %vm254_vm1, %v831_v29  ;;  %v833_v42 = vmul.f32 %v1582_v52, %v2075_v43  ;;  %v1584_v4 = vpop.eup %1583  ;;  %1587 = vrcp.f32 %v1052_v54 }
 0x3fb   : > { %v1079_v26 = vmul.f32 %v1584_v4, %v2016_v33 }
 0x3fd   : > { %v656_v22 = vpop.f32.mrf.mxu3 }
 0x3fe   : > { %1178 = vrot.lane.b32.xlu2 %v656_v22, %s1626_s26 }
 0x3ff   : > { %v1586_v61 = vpop.eup %1585 }
 0x400   : > { %v813_v10 = vpop.xlane.xlu2 %812  ;;  %v834_v12 = vmul.f32 %v1586_v61, %v2098_v6  ;;  %v1588_v9 = vpop.eup %1587 }
 0x401   : > { %1589 = vrcp.f32 %v813_v10  ;;  %v1080_v49 = vmul.f32 %v1588_v9, %v2022_v46 }
 0x402   : > { %1413 = vmatmul.msk.f32.gmra.mxu3 %vm254_vm1, %v832_v0  ;;  %1591 = vrcp.f32 %v1055_v60 }
 0x405   : > { %v659_v35 = vpop.f32.mrf.mxu3 }
 0x406   : > { %1180 = vrot.lane.b32.xlu1 %v659_v35, %s1626_s26 }
 0x407   : > { %v1590_v32 = vpop.eup %1589 }
 0x408   : > { %v1478_v20 = vpop.permute.xlu1 %1477  ;;  %v816_v43 = vpop.xlane.xlu2 %815  ;;  %v835_v33 = vmul.f32 %v1590_v32, %v2103_v1 }
 0x409   : > { %v1479_v7 = vunpack.i.l.bf16 %v1478_v20  ;;  %v1480_v48 = vunpack.i.h.bf16 %v1478_v20  ;;  %1593 = vrcp.f32 %v816_v43  ;;  %v1592_v63 = vpop.eup %1591  ;;  %v819_v58 = vpop.xlane.xlu0 %818 }
 0x40a   : > { %1414 = vmatmul.msk.f32.gmra.mxu3 %vm254_vm1, %v833_v42  ;;  %v1081_v62 = vmul.f32 %v1592_v63, %v2079_v56  ;;  %1595 = vrcp.f32 %v819_v58 }
 0x40b   : > { %1131 = vmatpush.msrb.mxu2 %v1479_v7 }
 0x40d   : > { %1132 = vmatpush.msrb.mxu2 %v1480_v48 }
 0x40e   : > { %1430 = vmatmul.msk.f32.vlgmr.msrb.gmra.mxu2 %vm254_vm1, %v1079_v26 }
 0x40f   : > { %v1594_v6 = vpop.eup %1593 }
 0x410   : > { %v836_v21 = vmul.f32 %v1594_v6, %v2110_v34  ;;  %v1596_v11 = vpop.eup %1595  ;;  %v1064_v55 = vpop.xlane.xlu2 %1063 }
 0x411   : > { %v822_v46 = vpop.xlane.xlu0 %821  ;;  %v837_v14 = vmul.f32 %v1596_v11, %v2114_v44 }
 0x412   : > { %1415 = vmatmul.msk.f32.gmra.mxu3 %vm254_vm1, %v834_v12  ;;  %1597 = vrcp.f32 %v822_v46 }
 0x416   : > { %1431 = vmatmul.msk.f32.gmra.mxu2 %vm254_vm1, %v1080_v49 }
 0x418   : > { %v1598_v1 = vpop.eup %1597  ;;  %v1067_v51 = vpop.xlane.xlu2 %1066 }
 0x419   : > { %v838_v15 = vmul.f32 %v1598_v1, %v2123_v47 }
 0x41a   : > { %1416 = vmatmul.msk.f32.gmra.mxu3 %vm254_vm1, %v835_v33 }
 0x41e   : > { %1432 = vmatmul.msk.f32.gmra.mxu2 %vm254_vm1, %v1081_v62 }
 0x420   : > { %v1167_v52 = vpop.permute.xlu2 %1166 }
 0x422   : > { %1417 = vmatmul.msk.f32.gmra.mxu3 %vm254_vm1, %v836_v21 }
 0x423   : > { %v1169_v42 = vpop.permute.xlu0 %1168 }
 0x424   : > { %v1255_v61 = vsel %vm174_vm0, %v1909_v38, %v1169_v42 }
 0x428   : > { %v1175_v20 = vpop.permute.xlu2 %1174 }
 0x429   : > { %v1258_v63 = vsel %vm174_vm0, %v1919_v3, %v1175_v20 }
 0x42a   : > { %1418 = vmatmul.msk.f32.gmra.mxu3 %vm254_vm1, %v837_v14 }
 0x42b   : > { %v1173_v7 = vpop.permute.xlu0 %1172 }
 0x432   : > { %1419 = vmatmul.msk.f32.gmra.mxu3 %vm254_vm1, %v838_v15 }
 0x433   : > { %v1058_v56 = vpop.xlane.xlu1 %1057 }
 0x434   : > { %1599 = vrcp.f32 %v1058_v56 }
 0x435   : > { %1601 = vrcp.f32 %v2150_v27 }
 0x436   : > { %1603 = vrcp.f32 %v1064_v55 }
 0x437   : > { %1605 = vrcp.f32 %v1067_v51 }
 0x43a   : > { %v1600_v19 = vpop.eup %1599 }
 0x43b   : > { %v1082_v34 = vmul.f32 %v1600_v19, %v2139_v36  ;;  %v1602_v13 = vpop.eup %1601  ;;  %v1070_v53 = vpop.xlane.xlu1 %1069 }
 0x43c   : > { %v1083_v44 = vmul.f32 %v1602_v13, %v2048_v30  ;;  %v1604_v47 = vpop.eup %1603  ;;  %1607 = vrcp.f32 %v1070_v53 }
 0x43d   : > { %1433 = vmatmul.msk.f32.gmra.mxu2 %vm254_vm1, %v1082_v34  ;;  %v1084_v40 = vmul.f32 %v1604_v47, %v2121_v37  ;;  %v1606_v18 = vpop.eup %1605 }
 0x43e   : > { %v1085_v36 = vmul.f32 %v1606_v18, %v2129_v57 }
 0x442   : > { %v1608_v25 = vpop.eup %1607 }
 0x443   : > { %v1086_v54 = vmul.f32 %v1608_v25, %v2144_v5 }
 0x445   : > { %1434 = vmatmul.msk.f32.gmra.mxu2 %vm254_vm1, %v1083_v44 }
 0x44d   : > { %1435 = vmatmul.msk.f32.gmra.mxu2 %vm254_vm1, %v1084_v40 }
 0x453   : > { %v1171_v43 = vpop.permute.xlu1 %1170 }
 0x454   : > { %v1256_v58 = vsel %vm174_vm0, %v1911_v39, %v1171_v43  ;;  %v1254_v39 = vsel %vm174_vm0, %v1906_v2, %v1167_v52  ;;  %v1257_v2 = vsel %vm174_vm0, %v1913_v41, %v1173_v7 }
 0x455   : > { %1436 = vmatmul.msk.f32.gmra.mxu2 %vm254_vm1, %v1085_v36 }
 0x458   : > { %v1179_v4 = vpop.permute.xlu2 %1178 }
 0x459   : > { %v1260_v40 = vsel %vm174_vm0, %v1929_v8, %v1179_v4 }
 0x45d   : > { %1437 = vmatmul.msk.f32.gmra.mxu2 %vm254_vm1, %v1086_v54 }
 0x468   : > { %v1177_v48 = vpop.permute.xlu0 %1176 }
 0x469   : > { %v1259_v3 = vsel %vm174_vm0, %v1921_v45, %v1177_v48 }
 0x478   : > { %v1181_v49 = vpop.permute.xlu1 %1180 }
 0x479   : > { %v1261_v41 = vsel %vm174_vm0, %v1933_v50, %v1181_v49 }
 0x47d   : > { %v886_v30 = vpop.f32.mrf.mxu3 }
 0x485   : > { %v889_v27 = vpop.f32.mrf.mxu3 }
 0x48d   : > { %v892_v17 = vpop.f32.mrf.mxu3 }
 0x491   : > { %v1134_v24 = vpop.f32.mrf.mxu2 }
 0x492   : > { %1230 = vrot.lane.b32.xlu1 %v1134_v24, %s1627_s27 }
 0x495   : > { %v895_v37 = vpop.f32.mrf.mxu3 }
 0x499   : > { %v1137_v16 = vpop.f32.mrf.mxu2 }
 0x49a   : > { %1232 = vrot.lane.b32.xlu0 %v1137_v16, %s1627_s27 }
 0x49d   : > { %v898_v23 = vpop.f32.mrf.mxu3 }
 0x4a1   : > { %v1140_v28 = vpop.f32.mrf.mxu2 }
 0x4a2   : > { %1234 = vrot.lane.b32.xlu2 %v1140_v28, %s1627_s27 }
 0x4a5   : > { %v901_v57 = vpop.f32.mrf.mxu3 }
 0x4aa   : > { %1200 = vrot.lane.b32.xlu2 %v889_v27, %s1628_s28 }
 0x4ad   : > { %v904_v29 = vpop.f32.mrf.mxu3 }
 0x4b2   : > { %1206 = vrot.lane.b32.xlu2 %v898_v23, %s1628_s28 }
 0x4b5   : > { %v907_v5 = vpop.f32.mrf.mxu3 }
 0x4ba   : > { %1212 = vrot.lane.b32.xlu2 %v907_v5, %s1628_s28 }
 0x4c0   : > { %v1143_v59 = vpop.f32.mrf.mxu2 }
 0x4c1   : > { %1236 = vrot.lane.b32.xlu1 %v1143_v59, %s1627_s27 }
 0x4c8   : > { %v1146_v22 = vpop.f32.mrf.mxu2 }
 0x4c9   : > { %1238 = vrot.lane.b32.xlu0 %v1146_v22, %s1627_s27  ;;  %1202 = vrot.lane.b32.xlu1 %v892_v17, %s1628_s28 }
 0x4d0   : > { %v1149_v31 = vpop.f32.mrf.mxu2 }
 0x4d1   : > { %1198 = vrot.lane.b32.xlu0 %v886_v30, %s1628_s28  ;;  %1208 = vrot.lane.b32.xlu1 %v901_v57, %s1628_s28 }
 0x4d2   : > { %1240 = vrot.lane.b32.xlu2 %v1149_v31, %s1627_s27 }
 0x4d8   : > { %v1152_v0 = vpop.f32.mrf.mxu2 }
 0x4d9   : > { %1204 = vrot.lane.b32.xlu0 %v895_v37, %s1628_s28  ;;  %1242 = vrot.lane.b32.xlu1 %v1152_v0, %s1627_s27 }
 0x4e0   : > { %v1155_v35 = vpop.f32.mrf.mxu2 }
 0x4e1   : > { %1210 = vrot.lane.b32.xlu0 %v904_v29, %s1628_s28 }
 0x4e9   : > { %1244 = vrot.lane.b32.xlu0 %v1155_v35, %s1627_s27 }
 0x4fc   : > { %v1235_v10 = vpop.permute.xlu2 %1234 }
 0x504   : > { %v1201_v26 = vpop.permute.xlu2 %1200  ;;  %v1231_v38 = vpop.permute.xlu1 %1230 }
 0x505   : > { %v1263_v60 = vsel %vm254_vm1, %v1255_v61, %v1201_v26 }
 0x50c   : > { %v1233_v12 = vpop.permute.xlu0 %1232  ;;  %v1207_v32 = vpop.permute.xlu2 %1206 }
 0x50d   : > { %v1272_v9 = vsel %vm1270_vm2, %v1263_v60, %v1233_v12  ;;  %v1266_v62 = vsel %vm254_vm1, %v1258_v63, %v1207_v32 }
 0x50e   : > { %1281 = vst.msk [vmem:[%s2196_s3 + $0x8] sm:$0xff] %vm1279_vm3, %v1272_v9 }
 0x514   : > { %v1213_v46 = vpop.permute.xlu2 %1212 }
 0x515   : > { %v1269_v54 = vsel %vm254_vm1, %v1261_v41, %v1213_v46 }
 0x52c   : > { %v1241_v19 = vpop.permute.xlu2 %1240 }
 0x533   : > { %v1237_v33 = vpop.permute.xlu1 %1236 }
 0x53b   : > { %v1239_v6 = vpop.permute.xlu0 %1238  ;;  %v1203_v21 = vpop.permute.xlu1 %1202 }
 0x53c   : > { %v1275_v11 = vsel %vm1270_vm2, %v1266_v62, %v1239_v6  ;;  %v1264_v14 = vsel %vm254_vm1, %v1256_v58, %v1203_v21 }
 0x53d   : > { %1284 = vst.msk [vmem:[%s2196_s3 + $0x20] sm:$0xff] %vm1279_vm3, %v1275_v11  ;;  %v1273_v1 = vsel %vm1270_vm2, %v1264_v14, %v1235_v10 }
 0x53e   : > { %1282 = vst.msk [vmem:[%s2196_s3 + $0x10] sm:$0xff] %vm1279_vm3, %v1273_v1 }
 0x543   : > { %v1199_v15 = vpop.permute.xlu0 %1198  ;;  %v1209_v56 = vpop.permute.xlu1 %1208 }
 0x544   : > { %v1262_v34 = vsel %vm254_vm1, %v1254_v39, %v1199_v15  ;;  %v1267_v55 = vsel %vm254_vm1, %v1259_v3, %v1209_v56 }
 0x545   : > { %v1271_v13 = vsel %vm1270_vm2, %v1262_v34, %v1231_v38  ;;  %v1276_v44 = vsel %vm1270_vm2, %v1267_v55, %v1241_v19 }
 0x546   : > { %1280 = vst.msk [vmem:[%s2196_s3] sm:$0xff] %vm1279_vm3, %v1271_v13 }
 0x547   : > { %1285 = vst.msk [vmem:[%s2196_s3 + $0x28] sm:$0xff] %vm1279_vm3, %v1276_v44 }
 0x54b   : > { %v1205_v45 = vpop.permute.xlu0 %1204  ;;  %v1243_v18 = vpop.permute.xlu1 %1242 }
 0x54c   : > { %v1265_v51 = vsel %vm254_vm1, %v1257_v2, %v1205_v45 }
 0x54d   : > { %v1274_v47 = vsel %vm1270_vm2, %v1265_v51, %v1237_v33 }
 0x54e   : > { %1283 = vst.msk [vmem:[%s2196_s3 + $0x18] sm:$0xff] %vm1279_vm3, %v1274_v47 }
 0x553   : > { %v1211_v53 = vpop.permute.xlu0 %1210 }
 0x554   : > { %v1268_v36 = vsel %vm254_vm1, %v1260_v40, %v1211_v53 }
 0x555   : > { %v1277_v25 = vsel %vm1270_vm2, %v1268_v36, %v1243_v18 }
 0x556   : > { %1286 = vst.msk [vmem:[%s2196_s3 + $0x30] sm:$0xff] %vm1279_vm3, %v1277_v25 }
 0x55b   : > { %v1245_v30 = vpop.permute.xlu0 %1244 }
 0x55c   : > { %v1278_v27 = vsel %vm1270_vm2, %v1269_v54, %v1245_v30 }
 0x55d   : > { %1287 = vst.msk [vmem:[%s2196_s3 + $0x38] sm:$0xff] %vm1279_vm3, %v1278_v27 }
 0x55e PF: > { %s12_s9 = sadd.s32 1, %s1617_s9  }
 0x55f   : > { %p9_p4 = scmp.ge.s32.totalorder %s12_s9, 4  }
 0x561   :  { %11 = sbr.rel (!%p9_p4) target bundleno = 1 (0x1), region = 61 }

</bundles_post_ra>
